<compile_context>
chip_gen: v7x
topology: tpu7x:2x2x1
jax: 0.10.0
libtpu: 0.0.40
codegen_flags: <defaults>
</compile_context>

<pallas_src>
import jax
import jax.numpy as jnp
from jax.experimental import pallas as pl
from jax.experimental.pallas import tpu as pltpu


def _make_decoder_kernel(n_layers: int):
    """Fused decoder kernel for a fixed number of LSTM layers."""
    n_in = 3 + 3 * n_layers + 2  # x, h0, c0, [w_ih, w_hh, bias]*L, w_out, b_out

    def kernel(*refs):
        x_ref, h0_ref, c0_ref = refs[:3]
        layer_refs = refs[3:3 + 3 * n_layers]
        w_out_ref, b_out_ref = refs[3 + 3 * n_layers:n_in]
        pred_ref, h_out_ref, c_out_ref = refs[n_in:n_in + 3]
        gx_scr, seq_scr = refs[n_in + 3:]          # (S*B, 4H) and (S*B, H) f32

        _, B, H = h0_ref.shape
        S = x_ref.shape[0] // B

        for layer in range(n_layers):
            w_ih = layer_refs[3 * layer][...]       # (in_l, 4H)  (layer 0: embedding folded in)
            w_hh = layer_refs[3 * layer + 1][...]   # (H,    4H)
            bias = layer_refs[3 * layer + 2][...]   # (1,    4H)  == b_ih + b_hh (+ folded b_emb term)

            # Hoisted, time-invariant input projection for ALL timesteps at once:
            # S*B rows through the MXU instead of B rows per serial step.
            inp = x_ref[...] if layer == 0 else seq_scr[...]
            gx_scr[...] = jnp.dot(inp, w_ih,
                                  preferred_element_type=jnp.float32) + bias

            h = h0_ref[layer].astype(jnp.float32)
            c = c0_ref[layer].astype(jnp.float32)

            # The LSTM recurrence is inherently serial; unrolled static loop.
            for t in range(S):
                # PyTorch LSTM gate order: i, f, g, o  -> (B, 4H) = 128 lanes here.
                gates = gx_scr[pl.ds(t * B, B), :] + jnp.dot(
                    h, w_hh, preferred_element_type=jnp.float32)
                # Full-width sigmoid via exp + approximate EUP reciprocal
                # (no full-precision divide), full-width tanh.
                sg = pl.reciprocal(1.0 + jnp.exp(-gates), approx=True)
                th = jnp.tanh(gates)
                i_g = sg[:, 0 * H:1 * H]
                f_g = sg[:, 1 * H:2 * H]
                g_g = th[:, 2 * H:3 * H]
                o_g = sg[:, 3 * H:4 * H]
                c = f_g * c + i_g * g_g
                h = o_g * jnp.tanh(c)
                # Feeds either the next LSTM layer or the deferred fc_out.
                seq_scr[pl.ds(t * B, B), :] = h

            h_out_ref[layer] = h.astype(h_out_ref.dtype)
            c_out_ref[layer] = c.astype(c_out_ref.dtype)

        # Deferred fc_out: one (S*B, H) @ (H, F) matmul + a single store.
        pred_ref[...] = (jnp.dot(seq_scr[...], w_out_ref[...],
                                 preferred_element_type=jnp.float32)
                         + b_out_ref[...]).astype(pred_ref.dtype)

    return kernel


@jax.jit
def decoder_forward(x, h0, c0, params):
    """Pallas Decoder.forward: returns (prediction, hidden, cell).

    x:  (S, B, features)     h0, c0: (n_layers, B, hide_size)
    params: dict with pre-transposed ((in, out) layout) weights
      w_emb (F, E), b_emb (1, E),
      layers = [(w_ih (in_l, 4H), w_hh (H, 4H), bias (1, 4H)), ...],
      w_out (H, F), b_out (1, F)
    """
    S, B, F = x.shape
    L, _, H = h0.shape
    hp = jax.lax.Precision.HIGHEST

    # TODO(synk): dropout implemented as identity (eval mode); training-mode
    # stochastic dropout would use pltpu.prng_seed + pltpu.stateful_bernoulli
    # (and would invalidate the embedding fold below).
    # Fold the embedding Linear into layer 0's input projection (exact in eval mode).
    layers = list(params["layers"])
    w_ih0, w_hh0, bias0 = layers[0]
    w_eff0 = jnp.dot(params["w_emb"], w_ih0, precision=hp)            # (F, 4H)
    b_eff0 = bias0 + jnp.dot(params["b_emb"], w_ih0, precision=hp)    # (1, 4H)
    layers[0] = (w_eff0, w_hh0, b_eff0)

    x_flat = x.reshape(S * B, F)   # flat layout -> denser hoisted matmul / stores

    inputs = [x_flat, h0, c0]
    for (w_ih, w_hh, bias) in layers:
        inputs += [w_ih, w_hh, bias]
    inputs += [params["w_out"], params["b_out"]]

    # Advisory cost so XLA can schedule/overlap the custom call with neighbors.
    flops = 2 * S * B * F * 4 * H                      # layer-0 hoisted projection
    flops += (L - 1) * 2 * S * B * H * 4 * H           # layers 1.. hoisted projections
    flops += L * S * (2 * B * H * 4 * H + 10 * B * H)  # recurrent matmul + cell update
    flops += 2 * S * B * H * F                         # deferred fc_out
    trans = L * S * B * 13 * H                         # exp + recip + 2x tanh per step
    bytes_accessed = sum(int(a.size) * a.dtype.itemsize for a in inputs)
    bytes_accessed += (x.dtype.itemsize * S * B * F
                       + h0.dtype.itemsize * L * B * H
                       + c0.dtype.itemsize * L * B * H)

    out_shape = (
        jax.ShapeDtypeStruct((S * B, F), x.dtype),     # prediction (flat)
        jax.ShapeDtypeStruct((L, B, H), h0.dtype),     # hidden
        jax.ShapeDtypeStruct((L, B, H), c0.dtype),     # cell
    )
    vmem = pl.BlockSpec(memory_space=pltpu.MemorySpace.VMEM)

    pred_flat, h_n, c_n = pl.pallas_call(
        _make_decoder_kernel(L),
        out_shape=out_shape,
        in_specs=[vmem] * len(inputs),
        out_specs=(vmem, vmem, vmem),
        scratch_shapes=[
            pltpu.VMEM((S * B, 4 * H), jnp.float32),   # hoisted gate pre-activations
            pltpu.VMEM((S * B, H), jnp.float32),       # inter-layer / fc_out sequence
        ],
        cost_estimate=pl.CostEstimate(
            flops=int(flops),
            transcendentals=int(trans),
            bytes_accessed=int(bytes_accessed)),
    )(*inputs)

    return pred_flat.reshape(S, B, F), h_n, c_n


def decoder_reference(x, h0, c0, params):
    """Pure-JAX reference with identical (eval-mode) semantics."""
    hp = jax.lax.Precision.HIGHEST
    S, B, F = x.shape
    L, _, H = h0.shape
    seq = jnp.einsum("sbf,fe->sbe", x, params["w_emb"], precision=hp) + params["b_emb"]
    h_list, c_list = [], []
    for l in range(L):
        w_ih, w_hh, bias = params["layers"][l]
        h, c = h0[l], c0[l]
        outs = []
        for t in range(S):
            gates = (jnp.dot(seq[t], w_ih, precision=hp)
                     + jnp.dot(h, w_hh, precision=hp) + bias)
            i_g = jax.nn.sigmoid(gates[:, 0:H])
            f_g = jax.nn.sigmoid(gates[:, H:2 * H])
            g_g = jnp.tanh(gates[:, 2 * H:3 * H])
            o_g = jax.nn.sigmoid(gates[:, 3 * H:4 * H])
            c = f_g * c + i_g * g_g
            h = o_g * jnp.tanh(c)
            outs.append(h)
        seq = jnp.stack(outs, axis=0)
        h_list.append(h)
        c_list.append(c)
    pred = jnp.einsum("sbh,hf->sbf", seq, params["w_out"], precision=hp) + params["b_out"]
    return pred, jnp.stack(h_list, 0), jnp.stack(c_list, 0)


if __name__ == "__main__":
    # Decoder(features=4, emb_dim=32, hide_size=32, n_layers=2, dropout -> eval)
    S, B, F = 8, 2, 4          # seq_len, batch, features
    E, H, L = 32, 32, 2        # emb_dim, hide_size, n_layers

    key = jax.random.PRNGKey(0)
    keys = jax.random.split(key, 7 + 3 * L)
    scale = 0.3

    x = jax.random.normal(keys[0], (S, B, F), dtype=jnp.float32)
    h0 = scale * jax.random.normal(keys[1], (L, B, H), dtype=jnp.float32)
    c0 = scale * jax.random.normal(keys[2], (L, B, H), dtype=jnp.float32)

    params = {
        "w_emb": scale * jax.random.normal(keys[3], (F, E), dtype=jnp.float32),
        "b_emb": scale * jax.random.normal(keys[4], (1, E), dtype=jnp.float32),
        "w_out": scale * jax.random.normal(keys[5], (H, F), dtype=jnp.float32),
        "b_out": scale * jax.random.normal(keys[6], (1, F), dtype=jnp.float32),
        "layers": [],
    }
    ki = 7
    for l in range(L):
        in_l = E if l == 0 else H
        w_ih = scale * jax.random.normal(keys[ki], (in_l, 4 * H), dtype=jnp.float32)
        w_hh = scale * jax.random.normal(keys[ki + 1], (H, 4 * H), dtype=jnp.float32)
        bias = scale * jax.random.normal(keys[ki + 2], (1, 4 * H), dtype=jnp.float32)
        params["layers"].append((w_ih, w_hh, bias))
        ki += 3

    pred, h_n, c_n = decoder_forward(x, h0, c0, params)
    jax.block_until_ready((pred, h_n, c_n))

    ref_pred, ref_h, ref_c = decoder_reference(x, h0, c0, params)

    assert pred.shape == (S, B, F) and h_n.shape == (L, B, H) and c_n.shape == (L, B, H)
    assert pred.dtype == x.dtype
    assert bool(jnp.allclose(pred, ref_pred, atol=2e-2, rtol=2e-2)), "prediction mismatch"
    assert bool(jnp.allclose(h_n, ref_h, atol=2e-2, rtol=2e-2)), "hidden mismatch"
    assert bool(jnp.allclose(c_n, ref_c, atol=2e-2, rtol=2e-2)), "cell mismatch"

    print("KERNEL_OK")
</pallas_src>

<mosaic_0001>
module attributes {stable_mosaic.version = 11 : i64} {
  func.func @kernel(%arg0: memref<16x4xf32, #tpu.memory_space<vmem>>, %arg1: memref<2x2x32xf32, #tpu.memory_space<vmem>>, %arg2: memref<2x2x32xf32, #tpu.memory_space<vmem>>, %arg3: memref<4x128xf32, #tpu.memory_space<vmem>>, %arg4: memref<32x128xf32, #tpu.memory_space<vmem>>, %arg5: memref<1x128xf32, #tpu.memory_space<vmem>>, %arg6: memref<32x128xf32, #tpu.memory_space<vmem>>, %arg7: memref<32x128xf32, #tpu.memory_space<vmem>>, %arg8: memref<1x128xf32, #tpu.memory_space<vmem>>, %arg9: memref<32x4xf32, #tpu.memory_space<vmem>>, %arg10: memref<1x4xf32, #tpu.memory_space<vmem>>, %arg11: memref<16x4xf32, #tpu.memory_space<vmem>>, %arg12: memref<2x2x32xf32, #tpu.memory_space<vmem>>, %arg13: memref<2x2x32xf32, #tpu.memory_space<vmem>>, %arg14: memref<16x128xf32, #tpu.memory_space<vmem>>, %arg15: memref<16x32xf32, #tpu.memory_space<vmem>>) attributes {dimension_semantics = [], scalar_prefetch = 0 : i64, scratch_operands = 2 : i64, tpu.core_type = #tpu.core_type<tc>} {
    %c0 = arith.constant 0 : index
    %c0_0 = arith.constant 0 : index
    %0 = vector.load %arg3[%c0, %c0_0] : memref<4x128xf32, #tpu.memory_space<vmem>>, vector<4x128xf32>
    %c0_1 = arith.constant 0 : index
    %c0_2 = arith.constant 0 : index
    %1 = vector.load %arg4[%c0_1, %c0_2] : memref<32x128xf32, #tpu.memory_space<vmem>>, vector<32x128xf32>
    %c0_3 = arith.constant 0 : index
    %c0_4 = arith.constant 0 : index
    %2 = vector.load %arg5[%c0_3, %c0_4] : memref<1x128xf32, #tpu.memory_space<vmem>>, vector<1x128xf32>
    %c0_5 = arith.constant 0 : index
    %c0_6 = arith.constant 0 : index
    %3 = vector.load %arg0[%c0_5, %c0_6] : memref<16x4xf32, #tpu.memory_space<vmem>>, vector<16x4xf32>
    %cst = arith.constant dense<0.000000e+00> : vector<16x128xf32>
    %4 = tpu.matmul %3, %0, %cst {dimension_numbers = #tpu.dot_dimension_numbers<[1], [0], [0], [1], [0, 0, 1, 1], [], []>} : vector<16x4xf32>, vector<4x128xf32>, vector<16x128xf32> -> vector<16x128xf32>
    %5 = vector.broadcast %2 : vector<1x128xf32> to vector<16x128xf32>
    %6 = arith.addf %4, %5 : vector<16x128xf32>
    %c0_7 = arith.constant 0 : index
    %c0_8 = arith.constant 0 : index
    %7 = vector.load %arg14[%c0_7, %c0_8] : memref<16x128xf32, #tpu.memory_space<vmem>>, vector<16x128xf32>
    tpu.vector_store %arg14[%c0_7, %c0_8], %6 {strides = array<i32>} : memref<16x128xf32, #tpu.memory_space<vmem>>, vector<16x128xf32>,
    %c0_9 = arith.constant 0 : index
    %c0_10 = arith.constant 0 : index
    %c0_11 = arith.constant 0 : index
    %8 = vector.load %arg1[%c0_9, %c0_10, %c0_11] : memref<2x2x32xf32, #tpu.memory_space<vmem>>, vector<1x2x32xf32>
    %9 = vector.shape_cast %8 : vector<1x2x32xf32> to vector<2x32xf32>
    %c0_12 = arith.constant 0 : index
    %c0_13 = arith.constant 0 : index
    %c0_14 = arith.constant 0 : index
    %10 = vector.load %arg2[%c0_12, %c0_13, %c0_14] : memref<2x2x32xf32, #tpu.memory_space<vmem>>, vector<1x2x32xf32>
    %11 = vector.shape_cast %10 : vector<1x2x32xf32> to vector<2x32xf32>
    %c0_15 = arith.constant 0 : index
    %c0_16 = arith.constant 0 : index
    %12 = vector.load %arg14[%c0_15, %c0_16] : memref<16x128xf32, #tpu.memory_space<vmem>>, vector<2x128xf32>
    %cst_17 = arith.constant dense<0.000000e+00> : vector<2x128xf32>
    %13 = tpu.matmul %9, %1, %cst_17 {dimension_numbers = #tpu.dot_dimension_numbers<[1], [0], [0], [1], [0, 0, 1, 1], [], []>} : vector<2x32xf32>, vector<32x128xf32>, vector<2x128xf32> -> vector<2x128xf32>
    %14 = arith.addf %12, %13 : vector<2x128xf32>
    %cst_18 = arith.constant 0.000000e+00 : f32
    %15 = vector.broadcast %cst_18 : f32 to vector<2x128xf32>
    %16 = arith.subf %15, %14 : vector<2x128xf32>
    %17 = math.exp %16 : vector<2x128xf32>
    %cst_19 = arith.constant 1.000000e+00 : f32
    %18 = vector.broadcast %cst_19 : f32 to vector<2x128xf32>
    %19 = arith.addf %18, %17 : vector<2x128xf32>
    %20 = tpu.reciprocal %19 {approx = true} : vector<2x128xf32> -> vector<2x128xf32>
    %21 = math.tanh %14 : vector<2x128xf32>
    %22 = vector.extract_strided_slice %20 {offsets = [0, 0], sizes = [2, 32], strides = [1, 1]} : vector<2x128xf32> to vector<2x32xf32>
    %23 = vector.extract_strided_slice %20 {offsets = [0, 32], sizes = [2, 32], strides = [1, 1]} : vector<2x128xf32> to vector<2x32xf32>
    %24 = vector.extract_strided_slice %21 {offsets = [0, 64], sizes = [2, 32], strides = [1, 1]} : vector<2x128xf32> to vector<2x32xf32>
    %25 = vector.extract_strided_slice %20 {offsets = [0, 96], sizes = [2, 32], strides = [1, 1]} : vector<2x128xf32> to vector<2x32xf32>
    %26 = arith.mulf %23, %11 : vector<2x32xf32>
    %27 = arith.mulf %22, %24 : vector<2x32xf32>
    %28 = arith.addf %26, %27 : vector<2x32xf32>
    %29 = math.tanh %28 : vector<2x32xf32>
    %30 = arith.mulf %25, %29 : vector<2x32xf32>
    %c0_20 = arith.constant 0 : index
    %c0_21 = arith.constant 0 : index
    %31 = vector.load %arg15[%c0_20, %c0_21] : memref<16x32xf32, #tpu.memory_space<vmem>>, vector<2x32xf32>
    tpu.vector_store %arg15[%c0_20, %c0_21], %30 {strides = array<i32>} : memref<16x32xf32, #tpu.memory_space<vmem>>, vector<2x32xf32>,
    %c2 = arith.constant 2 : index
    %c0_22 = arith.constant 0 : index
    %32 = vector.load %arg14[%c2, %c0_22] : memref<16x128xf32, #tpu.memory_space<vmem>>, vector<2x128xf32>
    %cst_23 = arith.constant dense<0.000000e+00> : vector<2x128xf32>
    %33 = tpu.matmul %30, %1, %cst_23 {dimension_numbers = #tpu.dot_dimension_numbers<[1], [0], [0], [1], [0, 0, 1, 1], [], []>} : vector<2x32xf32>, vector<32x128xf32>, vector<2x128xf32> -> vector<2x128xf32>
    %34 = arith.addf %32, %33 : vector<2x128xf32>
    %cst_24 = arith.constant 0.000000e+00 : f32
    %35 = vector.broadcast %cst_24 : f32 to vector<2x128xf32>
    %36 = arith.subf %35, %34 : vector<2x128xf32>
    %37 = math.exp %36 : vector<2x128xf32>
    %cst_25 = arith.constant 1.000000e+00 : f32
    %38 = vector.broadcast %cst_25 : f32 to vector<2x128xf32>
    %39 = arith.addf %38, %37 : vector<2x128xf32>
    %40 = tpu.reciprocal %39 {approx = true} : vector<2x128xf32> -> vector<2x128xf32>
    %41 = math.tanh %34 : vector<2x128xf32>
    %42 = vector.extract_strided_slice %40 {offsets = [0, 0], sizes = [2, 32], strides = [1, 1]} : vector<2x128xf32> to vector<2x32xf32>
    %43 = vector.extract_strided_slice %40 {offsets = [0, 32], sizes = [2, 32], strides = [1, 1]} : vector<2x128xf32> to vector<2x32xf32>
    %44 = vector.extract_strided_slice %41 {offsets = [0, 64], sizes = [2, 32], strides = [1, 1]} : vector<2x128xf32> to vector<2x32xf32>
    %45 = vector.extract_strided_slice %40 {offsets = [0, 96], sizes = [2, 32], strides = [1, 1]} : vector<2x128xf32> to vector<2x32xf32>
    %46 = arith.mulf %43, %28 : vector<2x32xf32>
    %47 = arith.mulf %42, %44 : vector<2x32xf32>
    %48 = arith.addf %46, %47 : vector<2x32xf32>
    %49 = math.tanh %48 : vector<2x32xf32>
    %50 = arith.mulf %45, %49 : vector<2x32xf32>
    %c2_26 = arith.constant 2 : index
    %c0_27 = arith.constant 0 : index
    %51 = vector.load %arg15[%c2_26, %c0_27] : memref<16x32xf32, #tpu.memory_space<vmem>>, vector<2x32xf32>
    tpu.vector_store %arg15[%c2_26, %c0_27], %50 {strides = array<i32>} : memref<16x32xf32, #tpu.memory_space<vmem>>, vector<2x32xf32>,
    %c4 = arith.constant 4 : index
    %c0_28 = arith.constant 0 : index
    %52 = vector.load %arg14[%c4, %c0_28] : memref<16x128xf32, #tpu.memory_space<vmem>>, vector<2x128xf32>
    %cst_29 = arith.constant dense<0.000000e+00> : vector<2x128xf32>
    %53 = tpu.matmul %50, %1, %cst_29 {dimension_numbers = #tpu.dot_dimension_numbers<[1], [0], [0], [1], [0, 0, 1, 1], [], []>} : vector<2x32xf32>, vector<32x128xf32>, vector<2x128xf32> -> vector<2x128xf32>
    %54 = arith.addf %52, %53 : vector<2x128xf32>
    %cst_30 = arith.constant 0.000000e+00 : f32
    %55 = vector.broadcast %cst_30 : f32 to vector<2x128xf32>
    %56 = arith.subf %55, %54 : vector<2x128xf32>
    %57 = math.exp %56 : vector<2x128xf32>
    %cst_31 = arith.constant 1.000000e+00 : f32
    %58 = vector.broadcast %cst_31 : f32 to vector<2x128xf32>
    %59 = arith.addf %58, %57 : vector<2x128xf32>
    %60 = tpu.reciprocal %59 {approx = true} : vector<2x128xf32> -> vector<2x128xf32>
    %61 = math.tanh %54 : vector<2x128xf32>
    %62 = vector.extract_strided_slice %60 {offsets = [0, 0], sizes = [2, 32], strides = [1, 1]} : vector<2x128xf32> to vector<2x32xf32>
    %63 = vector.extract_strided_slice %60 {offsets = [0, 32], sizes = [2, 32], strides = [1, 1]} : vector<2x128xf32> to vector<2x32xf32>
    %64 = vector.extract_strided_slice %61 {offsets = [0, 64], sizes = [2, 32], strides = [1, 1]} : vector<2x128xf32> to vector<2x32xf32>
    %65 = vector.extract_strided_slice %60 {offsets = [0, 96], sizes = [2, 32], strides = [1, 1]} : vector<2x128xf32> to vector<2x32xf32>
    %66 = arith.mulf %63, %48 : vector<2x32xf32>
    %67 = arith.mulf %62, %64 : vector<2x32xf32>
    %68 = arith.addf %66, %67 : vector<2x32xf32>
    %69 = math.tanh %68 : vector<2x32xf32>
    %70 = arith.mulf %65, %69 : vector<2x32xf32>
    %c4_32 = arith.constant 4 : index
    %c0_33 = arith.constant 0 : index
    %71 = vector.load %arg15[%c4_32, %c0_33] : memref<16x32xf32, #tpu.memory_space<vmem>>, vector<2x32xf32>
    tpu.vector_store %arg15[%c4_32, %c0_33], %70 {strides = array<i32>} : memref<16x32xf32, #tpu.memory_space<vmem>>, vector<2x32xf32>,
    %c6 = arith.constant 6 : index
    %c0_34 = arith.constant 0 : index
    %72 = vector.load %arg14[%c6, %c0_34] : memref<16x128xf32, #tpu.memory_space<vmem>>, vector<2x128xf32>
    %cst_35 = arith.constant dense<0.000000e+00> : vector<2x128xf32>
    %73 = tpu.matmul %70, %1, %cst_35 {dimension_numbers = #tpu.dot_dimension_numbers<[1], [0], [0], [1], [0, 0, 1, 1], [], []>} : vector<2x32xf32>, vector<32x128xf32>, vector<2x128xf32> -> vector<2x128xf32>
    %74 = arith.addf %72, %73 : vector<2x128xf32>
    %cst_36 = arith.constant 0.000000e+00 : f32
    %75 = vector.broadcast %cst_36 : f32 to vector<2x128xf32>
    %76 = arith.subf %75, %74 : vector<2x128xf32>
    %77 = math.exp %76 : vector<2x128xf32>
    %cst_37 = arith.constant 1.000000e+00 : f32
    %78 = vector.broadcast %cst_37 : f32 to vector<2x128xf32>
    %79 = arith.addf %78, %77 : vector<2x128xf32>
    %80 = tpu.reciprocal %79 {approx = true} : vector<2x128xf32> -> vector<2x128xf32>
    %81 = math.tanh %74 : vector<2x128xf32>
    %82 = vector.extract_strided_slice %80 {offsets = [0, 0], sizes = [2, 32], strides = [1, 1]} : vector<2x128xf32> to vector<2x32xf32>
    %83 = vector.extract_strided_slice %80 {offsets = [0, 32], sizes = [2, 32], strides = [1, 1]} : vector<2x128xf32> to vector<2x32xf32>
    %84 = vector.extract_strided_slice %81 {offsets = [0, 64], sizes = [2, 32], strides = [1, 1]} : vector<2x128xf32> to vector<2x32xf32>
    %85 = vector.extract_strided_slice %80 {offsets = [0, 96], sizes = [2, 32], strides = [1, 1]} : vector<2x128xf32> to vector<2x32xf32>
    %86 = arith.mulf %83, %68 : vector<2x32xf32>
    %87 = arith.mulf %82, %84 : vector<2x32xf32>
    %88 = arith.addf %86, %87 : vector<2x32xf32>
    %89 = math.tanh %88 : vector<2x32xf32>
    %90 = arith.mulf %85, %89 : vector<2x32xf32>
    %c6_38 = arith.constant 6 : index
    %c0_39 = arith.constant 0 : index
    %91 = vector.load %arg15[%c6_38, %c0_39] : memref<16x32xf32, #tpu.memory_space<vmem>>, vector<2x32xf32>
    tpu.vector_store %arg15[%c6_38, %c0_39], %90 {strides = array<i32>} : memref<16x32xf32, #tpu.memory_space<vmem>>, vector<2x32xf32>,
    %c8 = arith.constant 8 : index
    %c0_40 = arith.constant 0 : index
    %92 = vector.load %arg14[%c8, %c0_40] : memref<16x128xf32, #tpu.memory_space<vmem>>, vector<2x128xf32>
    %cst_41 = arith.constant dense<0.000000e+00> : vector<2x128xf32>
    %93 = tpu.matmul %90, %1, %cst_41 {dimension_numbers = #tpu.dot_dimension_numbers<[1], [0], [0], [1], [0, 0, 1, 1], [], []>} : vector<2x32xf32>, vector<32x128xf32>, vector<2x128xf32> -> vector<2x128xf32>
    %94 = arith.addf %92, %93 : vector<2x128xf32>
    %cst_42 = arith.constant 0.000000e+00 : f32
    %95 = vector.broadcast %cst_42 : f32 to vector<2x128xf32>
    %96 = arith.subf %95, %94 : vector<2x128xf32>
    %97 = math.exp %96 : vector<2x128xf32>
    %cst_43 = arith.constant 1.000000e+00 : f32
    %98 = vector.broadcast %cst_43 : f32 to vector<2x128xf32>
    %99 = arith.addf %98, %97 : vector<2x128xf32>
    %100 = tpu.reciprocal %99 {approx = true} : vector<2x128xf32> -> vector<2x128xf32>
    %101 = math.tanh %94 : vector<2x128xf32>
    %102 = vector.extract_strided_slice %100 {offsets = [0, 0], sizes = [2, 32], strides = [1, 1]} : vector<2x128xf32> to vector<2x32xf32>
    %103 = vector.extract_strided_slice %100 {offsets = [0, 32], sizes = [2, 32], strides = [1, 1]} : vector<2x128xf32> to vector<2x32xf32>
    %104 = vector.extract_strided_slice %101 {offsets = [0, 64], sizes = [2, 32], strides = [1, 1]} : vector<2x128xf32> to vector<2x32xf32>
    %105 = vector.extract_strided_slice %100 {offsets = [0, 96], sizes = [2, 32], strides = [1, 1]} : vector<2x128xf32> to vector<2x32xf32>
    %106 = arith.mulf %103, %88 : vector<2x32xf32>
    %107 = arith.mulf %102, %104 : vector<2x32xf32>
    %108 = arith.addf %106, %107 : vector<2x32xf32>
    %109 = math.tanh %108 : vector<2x32xf32>
    %110 = arith.mulf %105, %109 : vector<2x32xf32>
    %c8_44 = arith.constant 8 : index
    %c0_45 = arith.constant 0 : index
    %111 = vector.load %arg15[%c8_44, %c0_45] : memref<16x32xf32, #tpu.memory_space<vmem>>, vector<2x32xf32>
    tpu.vector_store %arg15[%c8_44, %c0_45], %110 {strides = array<i32>} : memref<16x32xf32, #tpu.memory_space<vmem>>, vector<2x32xf32>,
    %c10 = arith.constant 10 : index
    %c0_46 = arith.constant 0 : index
    %112 = vector.load %arg14[%c10, %c0_46] : memref<16x128xf32, #tpu.memory_space<vmem>>, vector<2x128xf32>
    %cst_47 = arith.constant dense<0.000000e+00> : vector<2x128xf32>
    %113 = tpu.matmul %110, %1, %cst_47 {dimension_numbers = #tpu.dot_dimension_numbers<[1], [0], [0], [1], [0, 0, 1, 1], [], []>} : vector<2x32xf32>, vector<32x128xf32>, vector<2x128xf32> -> vector<2x128xf32>
    %114 = arith.addf %112, %113 : vector<2x128xf32>
    %cst_48 = arith.constant 0.000000e+00 : f32
    %115 = vector.broadcast %cst_48 : f32 to vector<2x128xf32>
    %116 = arith.subf %115, %114 : vector<2x128xf32>
    %117 = math.exp %116 : vector<2x128xf32>
    %cst_49 = arith.constant 1.000000e+00 : f32
    %118 = vector.broadcast %cst_49 : f32 to vector<2x128xf32>
    %119 = arith.addf %118, %117 : vector<2x128xf32>
    %120 = tpu.reciprocal %119 {approx = true} : vector<2x128xf32> -> vector<2x128xf32>
    %121 = math.tanh %114 : vector<2x128xf32>
    %122 = vector.extract_strided_slice %120 {offsets = [0, 0], sizes = [2, 32], strides = [1, 1]} : vector<2x128xf32> to vector<2x32xf32>
    %123 = vector.extract_strided_slice %120 {offsets = [0, 32], sizes = [2, 32], strides = [1, 1]} : vector<2x128xf32> to vector<2x32xf32>
    %124 = vector.extract_strided_slice %121 {offsets = [0, 64], sizes = [2, 32], strides = [1, 1]} : vector<2x128xf32> to vector<2x32xf32>
    %125 = vector.extract_strided_slice %120 {offsets = [0, 96], sizes = [2, 32], strides = [1, 1]} : vector<2x128xf32> to vector<2x32xf32>
    %126 = arith.mulf %123, %108 : vector<2x32xf32>
    %127 = arith.mulf %122, %124 : vector<2x32xf32>
    %128 = arith.addf %126, %127 : vector<2x32xf32>
    %129 = math.tanh %128 : vector<2x32xf32>
    %130 = arith.mulf %125, %129 : vector<2x32xf32>
    %c10_50 = arith.constant 10 : index
    %c0_51 = arith.constant 0 : index
    %131 = vector.load %arg15[%c10_50, %c0_51] : memref<16x32xf32, #tpu.memory_space<vmem>>, vector<2x32xf32>
    tpu.vector_store %arg15[%c10_50, %c0_51], %130 {strides = array<i32>} : memref<16x32xf32, #tpu.memory_space<vmem>>, vector<2x32xf32>,
    %c12 = arith.constant 12 : index
    %c0_52 = arith.constant 0 : index
    %132 = vector.load %arg14[%c12, %c0_52] : memref<16x128xf32, #tpu.memory_space<vmem>>, vector<2x128xf32>
    %cst_53 = arith.constant dense<0.000000e+00> : vector<2x128xf32>
    %133 = tpu.matmul %130, %1, %cst_53 {dimension_numbers = #tpu.dot_dimension_numbers<[1], [0], [0], [1], [0, 0, 1, 1], [], []>} : vector<2x32xf32>, vector<32x128xf32>, vector<2x128xf32> -> vector<2x128xf32>
    %134 = arith.addf %132, %133 : vector<2x128xf32>
    %cst_54 = arith.constant 0.000000e+00 : f32
    %135 = vector.broadcast %cst_54 : f32 to vector<2x128xf32>
    %136 = arith.subf %135, %134 : vector<2x128xf32>
    %137 = math.exp %136 : vector<2x128xf32>
    %cst_55 = arith.constant 1.000000e+00 : f32
    %138 = vector.broadcast %cst_55 : f32 to vector<2x128xf32>
    %139 = arith.addf %138, %137 : vector<2x128xf32>
    %140 = tpu.reciprocal %139 {approx = true} : vector<2x128xf32> -> vector<2x128xf32>
    %141 = math.tanh %134 : vector<2x128xf32>
    %142 = vector.extract_strided_slice %140 {offsets = [0, 0], sizes = [2, 32], strides = [1, 1]} : vector<2x128xf32> to vector<2x32xf32>
    %143 = vector.extract_strided_slice %140 {offsets = [0, 32], sizes = [2, 32], strides = [1, 1]} : vector<2x128xf32> to vector<2x32xf32>
    %144 = vector.extract_strided_slice %141 {offsets = [0, 64], sizes = [2, 32], strides = [1, 1]} : vector<2x128xf32> to vector<2x32xf32>
    %145 = vector.extract_strided_slice %140 {offsets = [0, 96], sizes = [2, 32], strides = [1, 1]} : vector<2x128xf32> to vector<2x32xf32>
    %146 = arith.mulf %143, %128 : vector<2x32xf32>
    %147 = arith.mulf %142, %144 : vector<2x32xf32>
    %148 = arith.addf %146, %147 : vector<2x32xf32>
    %149 = math.tanh %148 : vector<2x32xf32>
    %150 = arith.mulf %145, %149 : vector<2x32xf32>
    %c12_56 = arith.constant 12 : index
    %c0_57 = arith.constant 0 : index
    %151 = vector.load %arg15[%c12_56, %c0_57] : memref<16x32xf32, #tpu.memory_space<vmem>>, vector<2x32xf32>
    tpu.vector_store %arg15[%c12_56, %c0_57], %150 {strides = array<i32>} : memref<16x32xf32, #tpu.memory_space<vmem>>, vector<2x32xf32>,
    %c14 = arith.constant 14 : index
    %c0_58 = arith.constant 0 : index
    %152 = vector.load %arg14[%c14, %c0_58] : memref<16x128xf32, #tpu.memory_space<vmem>>, vector<2x128xf32>
    %cst_59 = arith.constant dense<0.000000e+00> : vector<2x128xf32>
    %153 = tpu.matmul %150, %1, %cst_59 {dimension_numbers = #tpu.dot_dimension_numbers<[1], [0], [0], [1], [0, 0, 1, 1], [], []>} : vector<2x32xf32>, vector<32x128xf32>, vector<2x128xf32> -> vector<2x128xf32>
    %154 = arith.addf %152, %153 : vector<2x128xf32>
    %cst_60 = arith.constant 0.000000e+00 : f32
    %155 = vector.broadcast %cst_60 : f32 to vector<2x128xf32>
    %156 = arith.subf %155, %154 : vector<2x128xf32>
    %157 = math.exp %156 : vector<2x128xf32>
    %cst_61 = arith.constant 1.000000e+00 : f32
    %158 = vector.broadcast %cst_61 : f32 to vector<2x128xf32>
    %159 = arith.addf %158, %157 : vector<2x128xf32>
    %160 = tpu.reciprocal %159 {approx = true} : vector<2x128xf32> -> vector<2x128xf32>
    %161 = math.tanh %154 : vector<2x128xf32>
    %162 = vector.extract_strided_slice %160 {offsets = [0, 0], sizes = [2, 32], strides = [1, 1]} : vector<2x128xf32> to vector<2x32xf32>
    %163 = vector.extract_strided_slice %160 {offsets = [0, 32], sizes = [2, 32], strides = [1, 1]} : vector<2x128xf32> to vector<2x32xf32>
    %164 = vector.extract_strided_slice %161 {offsets = [0, 64], sizes = [2, 32], strides = [1, 1]} : vector<2x128xf32> to vector<2x32xf32>
    %165 = vector.extract_strided_slice %160 {offsets = [0, 96], sizes = [2, 32], strides = [1, 1]} : vector<2x128xf32> to vector<2x32xf32>
    %166 = arith.mulf %163, %148 : vector<2x32xf32>
    %167 = arith.mulf %162, %164 : vector<2x32xf32>
    %168 = arith.addf %166, %167 : vector<2x32xf32>
    %169 = math.tanh %168 : vector<2x32xf32>
    %170 = arith.mulf %165, %169 : vector<2x32xf32>
    %c14_62 = arith.constant 14 : index
    %c0_63 = arith.constant 0 : index
    %171 = vector.load %arg15[%c14_62, %c0_63] : memref<16x32xf32, #tpu.memory_space<vmem>>, vector<2x32xf32>
    tpu.vector_store %arg15[%c14_62, %c0_63], %170 {strides = array<i32>} : memref<16x32xf32, #tpu.memory_space<vmem>>, vector<2x32xf32>,
    %c0_64 = arith.constant 0 : index
    %c0_65 = arith.constant 0 : index
    %c0_66 = arith.constant 0 : index
    %172 = vector.load %arg12[%c0_64, %c0_65, %c0_66] : memref<2x2x32xf32, #tpu.memory_space<vmem>>, vector<1x2x32xf32>
    %173 = vector.shape_cast %172 : vector<1x2x32xf32> to vector<2x32xf32>
    %174 = vector.shape_cast %170 : vector<2x32xf32> to vector<1x2x32xf32>
    tpu.vector_store %arg12[%c0_64, %c0_65, %c0_66], %174 {strides = array<i32>} : memref<2x2x32xf32, #tpu.memory_space<vmem>>, vector<1x2x32xf32>,
    %c0_67 = arith.constant 0 : index
    %c0_68 = arith.constant 0 : index
    %c0_69 = arith.constant 0 : index
    %175 = vector.load %arg13[%c0_67, %c0_68, %c0_69] : memref<2x2x32xf32, #tpu.memory_space<vmem>>, vector<1x2x32xf32>
    %176 = vector.shape_cast %175 : vector<1x2x32xf32> to vector<2x32xf32>
    %177 = vector.shape_cast %168 : vector<2x32xf32> to vector<1x2x32xf32>
    tpu.vector_store %arg13[%c0_67, %c0_68, %c0_69], %177 {strides = array<i32>} : memref<2x2x32xf32, #tpu.memory_space<vmem>>, vector<1x2x32xf32>,
    %c0_70 = arith.constant 0 : index
    %c0_71 = arith.constant 0 : index
    %178 = vector.load %arg6[%c0_70, %c0_71] : memref<32x128xf32, #tpu.memory_space<vmem>>, vector<32x128xf32>
    %c0_72 = arith.constant 0 : index
    %c0_73 = arith.constant 0 : index
    %179 = vector.load %arg7[%c0_72, %c0_73] : memref<32x128xf32, #tpu.memory_space<vmem>>, vector<32x128xf32>
    %c0_74 = arith.constant 0 : index
    %c0_75 = arith.constant 0 : index
    %180 = vector.load %arg8[%c0_74, %c0_75] : memref<1x128xf32, #tpu.memory_space<vmem>>, vector<1x128xf32>
    %c0_76 = arith.constant 0 : index
    %c0_77 = arith.constant 0 : index
    %181 = vector.load %arg15[%c0_76, %c0_77] : memref<16x32xf32, #tpu.memory_space<vmem>>, vector<16x32xf32>
    %cst_78 = arith.constant dense<0.000000e+00> : vector<16x128xf32>
    %182 = tpu.matmul %181, %178, %cst_78 {dimension_numbers = #tpu.dot_dimension_numbers<[1], [0], [0], [1], [0, 0, 1, 1], [], []>} : vector<16x32xf32>, vector<32x128xf32>, vector<16x128xf32> -> vector<16x128xf32>
    %183 = vector.broadcast %180 : vector<1x128xf32> to vector<16x128xf32>
    %184 = arith.addf %182, %183 : vector<16x128xf32>
    %c0_79 = arith.constant 0 : index
    %c0_80 = arith.constant 0 : index
    %185 = vector.load %arg14[%c0_79, %c0_80] : memref<16x128xf32, #tpu.memory_space<vmem>>, vector<16x128xf32>
    tpu.vector_store %arg14[%c0_79, %c0_80], %184 {strides = array<i32>} : memref<16x128xf32, #tpu.memory_space<vmem>>, vector<16x128xf32>,
    %c1 = arith.constant 1 : index
    %c0_81 = arith.constant 0 : index
    %c0_82 = arith.constant 0 : index
    %186 = vector.load %arg1[%c1, %c0_81, %c0_82] : memref<2x2x32xf32, #tpu.memory_space<vmem>>, vector<1x2x32xf32>
    %187 = vector.shape_cast %186 : vector<1x2x32xf32> to vector<2x32xf32>
    %c1_83 = arith.constant 1 : index
    %c0_84 = arith.constant 0 : index
    %c0_85 = arith.constant 0 : index
    %188 = vector.load %arg2[%c1_83, %c0_84, %c0_85] : memref<2x2x32xf32, #tpu.memory_space<vmem>>, vector<1x2x32xf32>
    %189 = vector.shape_cast %188 : vector<1x2x32xf32> to vector<2x32xf32>
    %c0_86 = arith.constant 0 : index
    %c0_87 = arith.constant 0 : index
    %190 = vector.load %arg14[%c0_86, %c0_87] : memref<16x128xf32, #tpu.memory_space<vmem>>, vector<2x128xf32>
    %cst_88 = arith.constant dense<0.000000e+00> : vector<2x128xf32>
    %191 = tpu.matmul %187, %179, %cst_88 {dimension_numbers = #tpu.dot_dimension_numbers<[1], [0], [0], [1], [0, 0, 1, 1], [], []>} : vector<2x32xf32>, vector<32x128xf32>, vector<2x128xf32> -> vector<2x128xf32>
    %192 = arith.addf %190, %191 : vector<2x128xf32>
    %cst_89 = arith.constant 0.000000e+00 : f32
    %193 = vector.broadcast %cst_89 : f32 to vector<2x128xf32>
    %194 = arith.subf %193, %192 : vector<2x128xf32>
    %195 = math.exp %194 : vector<2x128xf32>
    %cst_90 = arith.constant 1.000000e+00 : f32
    %196 = vector.broadcast %cst_90 : f32 to vector<2x128xf32>
    %197 = arith.addf %196, %195 : vector<2x128xf32>
    %198 = tpu.reciprocal %197 {approx = true} : vector<2x128xf32> -> vector<2x128xf32>
    %199 = math.tanh %192 : vector<2x128xf32>
    %200 = vector.extract_strided_slice %198 {offsets = [0, 0], sizes = [2, 32], strides = [1, 1]} : vector<2x128xf32> to vector<2x32xf32>
    %201 = vector.extract_strided_slice %198 {offsets = [0, 32], sizes = [2, 32], strides = [1, 1]} : vector<2x128xf32> to vector<2x32xf32>
    %202 = vector.extract_strided_slice %199 {offsets = [0, 64], sizes = [2, 32], strides = [1, 1]} : vector<2x128xf32> to vector<2x32xf32>
    %203 = vector.extract_strided_slice %198 {offsets = [0, 96], sizes = [2, 32], strides = [1, 1]} : vector<2x128xf32> to vector<2x32xf32>
    %204 = arith.mulf %201, %189 : vector<2x32xf32>
    %205 = arith.mulf %200, %202 : vector<2x32xf32>
    %206 = arith.addf %204, %205 : vector<2x32xf32>
    %207 = math.tanh %206 : vector<2x32xf32>
    %208 = arith.mulf %203, %207 : vector<2x32xf32>
    %c0_91 = arith.constant 0 : index
    %c0_92 = arith.constant 0 : index
    %209 = vector.load %arg15[%c0_91, %c0_92] : memref<16x32xf32, #tpu.memory_space<vmem>>, vector<2x32xf32>
    tpu.vector_store %arg15[%c0_91, %c0_92], %208 {strides = array<i32>} : memref<16x32xf32, #tpu.memory_space<vmem>>, vector<2x32xf32>,
    %c2_93 = arith.constant 2 : index
    %c0_94 = arith.constant 0 : index
    %210 = vector.load %arg14[%c2_93, %c0_94] : memref<16x128xf32, #tpu.memory_space<vmem>>, vector<2x128xf32>
    %cst_95 = arith.constant dense<0.000000e+00> : vector<2x128xf32>
    %211 = tpu.matmul %208, %179, %cst_95 {dimension_numbers = #tpu.dot_dimension_numbers<[1], [0], [0], [1], [0, 0, 1, 1], [], []>} : vector<2x32xf32>, vector<32x128xf32>, vector<2x128xf32> -> vector<2x128xf32>
    %212 = arith.addf %210, %211 : vector<2x128xf32>
    %cst_96 = arith.constant 0.000000e+00 : f32
    %213 = vector.broadcast %cst_96 : f32 to vector<2x128xf32>
    %214 = arith.subf %213, %212 : vector<2x128xf32>
    %215 = math.exp %214 : vector<2x128xf32>
    %cst_97 = arith.constant 1.000000e+00 : f32
    %216 = vector.broadcast %cst_97 : f32 to vector<2x128xf32>
    %217 = arith.addf %216, %215 : vector<2x128xf32>
    %218 = tpu.reciprocal %217 {approx = true} : vector<2x128xf32> -> vector<2x128xf32>
    %219 = math.tanh %212 : vector<2x128xf32>
    %220 = vector.extract_strided_slice %218 {offsets = [0, 0], sizes = [2, 32], strides = [1, 1]} : vector<2x128xf32> to vector<2x32xf32>
    %221 = vector.extract_strided_slice %218 {offsets = [0, 32], sizes = [2, 32], strides = [1, 1]} : vector<2x128xf32> to vector<2x32xf32>
    %222 = vector.extract_strided_slice %219 {offsets = [0, 64], sizes = [2, 32], strides = [1, 1]} : vector<2x128xf32> to vector<2x32xf32>
    %223 = vector.extract_strided_slice %218 {offsets = [0, 96], sizes = [2, 32], strides = [1, 1]} : vector<2x128xf32> to vector<2x32xf32>
    %224 = arith.mulf %221, %206 : vector<2x32xf32>
    %225 = arith.mulf %220, %222 : vector<2x32xf32>
    %226 = arith.addf %224, %225 : vector<2x32xf32>
    %227 = math.tanh %226 : vector<2x32xf32>
    %228 = arith.mulf %223, %227 : vector<2x32xf32>
    %c2_98 = arith.constant 2 : index
    %c0_99 = arith.constant 0 : index
    %229 = vector.load %arg15[%c2_98, %c0_99] : memref<16x32xf32, #tpu.memory_space<vmem>>, vector<2x32xf32>
    tpu.vector_store %arg15[%c2_98, %c0_99], %228 {strides = array<i32>} : memref<16x32xf32, #tpu.memory_space<vmem>>, vector<2x32xf32>,
    %c4_100 = arith.constant 4 : index
    %c0_101 = arith.constant 0 : index
    %230 = vector.load %arg14[%c4_100, %c0_101] : memref<16x128xf32, #tpu.memory_space<vmem>>, vector<2x128xf32>
    %cst_102 = arith.constant dense<0.000000e+00> : vector<2x128xf32>
    %231 = tpu.matmul %228, %179, %cst_102 {dimension_numbers = #tpu.dot_dimension_numbers<[1], [0], [0], [1], [0, 0, 1, 1], [], []>} : vector<2x32xf32>, vector<32x128xf32>, vector<2x128xf32> -> vector<2x128xf32>
    %232 = arith.addf %230, %231 : vector<2x128xf32>
    %cst_103 = arith.constant 0.000000e+00 : f32
    %233 = vector.broadcast %cst_103 : f32 to vector<2x128xf32>
    %234 = arith.subf %233, %232 : vector<2x128xf32>
    %235 = math.exp %234 : vector<2x128xf32>
    %cst_104 = arith.constant 1.000000e+00 : f32
    %236 = vector.broadcast %cst_104 : f32 to vector<2x128xf32>
    %237 = arith.addf %236, %235 : vector<2x128xf32>
    %238 = tpu.reciprocal %237 {approx = true} : vector<2x128xf32> -> vector<2x128xf32>
    %239 = math.tanh %232 : vector<2x128xf32>
    %240 = vector.extract_strided_slice %238 {offsets = [0, 0], sizes = [2, 32], strides = [1, 1]} : vector<2x128xf32> to vector<2x32xf32>
    %241 = vector.extract_strided_slice %238 {offsets = [0, 32], sizes = [2, 32], strides = [1, 1]} : vector<2x128xf32> to vector<2x32xf32>
    %242 = vector.extract_strided_slice %239 {offsets = [0, 64], sizes = [2, 32], strides = [1, 1]} : vector<2x128xf32> to vector<2x32xf32>
    %243 = vector.extract_strided_slice %238 {offsets = [0, 96], sizes = [2, 32], strides = [1, 1]} : vector<2x128xf32> to vector<2x32xf32>
    %244 = arith.mulf %241, %226 : vector<2x32xf32>
    %245 = arith.mulf %240, %242 : vector<2x32xf32>
    %246 = arith.addf %244, %245 : vector<2x32xf32>
    %247 = math.tanh %246 : vector<2x32xf32>
    %248 = arith.mulf %243, %247 : vector<2x32xf32>
    %c4_105 = arith.constant 4 : index
    %c0_106 = arith.constant 0 : index
    %249 = vector.load %arg15[%c4_105, %c0_106] : memref<16x32xf32, #tpu.memory_space<vmem>>, vector<2x32xf32>
    tpu.vector_store %arg15[%c4_105, %c0_106], %248 {strides = array<i32>} : memref<16x32xf32, #tpu.memory_space<vmem>>, vector<2x32xf32>,
    %c6_107 = arith.constant 6 : index
    %c0_108 = arith.constant 0 : index
    %250 = vector.load %arg14[%c6_107, %c0_108] : memref<16x128xf32, #tpu.memory_space<vmem>>, vector<2x128xf32>
    %cst_109 = arith.constant dense<0.000000e+00> : vector<2x128xf32>
    %251 = tpu.matmul %248, %179, %cst_109 {dimension_numbers = #tpu.dot_dimension_numbers<[1], [0], [0], [1], [0, 0, 1, 1], [], []>} : vector<2x32xf32>, vector<32x128xf32>, vector<2x128xf32> -> vector<2x128xf32>
    %252 = arith.addf %250, %251 : vector<2x128xf32>
    %cst_110 = arith.constant 0.000000e+00 : f32
    %253 = vector.broadcast %cst_110 : f32 to vector<2x128xf32>
    %254 = arith.subf %253, %252 : vector<2x128xf32>
    %255 = math.exp %254 : vector<2x128xf32>
    %cst_111 = arith.constant 1.000000e+00 : f32
    %256 = vector.broadcast %cst_111 : f32 to vector<2x128xf32>
    %257 = arith.addf %256, %255 : vector<2x128xf32>
    %258 = tpu.reciprocal %257 {approx = true} : vector<2x128xf32> -> vector<2x128xf32>
    %259 = math.tanh %252 : vector<2x128xf32>
    %260 = vector.extract_strided_slice %258 {offsets = [0, 0], sizes = [2, 32], strides = [1, 1]} : vector<2x128xf32> to vector<2x32xf32>
    %261 = vector.extract_strided_slice %258 {offsets = [0, 32], sizes = [2, 32], strides = [1, 1]} : vector<2x128xf32> to vector<2x32xf32>
    %262 = vector.extract_strided_slice %259 {offsets = [0, 64], sizes = [2, 32], strides = [1, 1]} : vector<2x128xf32> to vector<2x32xf32>
    %263 = vector.extract_strided_slice %258 {offsets = [0, 96], sizes = [2, 32], strides = [1, 1]} : vector<2x128xf32> to vector<2x32xf32>
    %264 = arith.mulf %261, %246 : vector<2x32xf32>
    %265 = arith.mulf %260, %262 : vector<2x32xf32>
    %266 = arith.addf %264, %265 : vector<2x32xf32>
    %267 = math.tanh %266 : vector<2x32xf32>
    %268 = arith.mulf %263, %267 : vector<2x32xf32>
    %c6_112 = arith.constant 6 : index
    %c0_113 = arith.constant 0 : index
    %269 = vector.load %arg15[%c6_112, %c0_113] : memref<16x32xf32, #tpu.memory_space<vmem>>, vector<2x32xf32>
    tpu.vector_store %arg15[%c6_112, %c0_113], %268 {strides = array<i32>} : memref<16x32xf32, #tpu.memory_space<vmem>>, vector<2x32xf32>,
    %c8_114 = arith.constant 8 : index
    %c0_115 = arith.constant 0 : index
    %270 = vector.load %arg14[%c8_114, %c0_115] : memref<16x128xf32, #tpu.memory_space<vmem>>, vector<2x128xf32>
    %cst_116 = arith.constant dense<0.000000e+00> : vector<2x128xf32>
    %271 = tpu.matmul %268, %179, %cst_116 {dimension_numbers = #tpu.dot_dimension_numbers<[1], [0], [0], [1], [0, 0, 1, 1], [], []>} : vector<2x32xf32>, vector<32x128xf32>, vector<2x128xf32> -> vector<2x128xf32>
    %272 = arith.addf %270, %271 : vector<2x128xf32>
    %cst_117 = arith.constant 0.000000e+00 : f32
    %273 = vector.broadcast %cst_117 : f32 to vector<2x128xf32>
    %274 = arith.subf %273, %272 : vector<2x128xf32>
    %275 = math.exp %274 : vector<2x128xf32>
    %cst_118 = arith.constant 1.000000e+00 : f32
    %276 = vector.broadcast %cst_118 : f32 to vector<2x128xf32>
    %277 = arith.addf %276, %275 : vector<2x128xf32>
    %278 = tpu.reciprocal %277 {approx = true} : vector<2x128xf32> -> vector<2x128xf32>
    %279 = math.tanh %272 : vector<2x128xf32>
    %280 = vector.extract_strided_slice %278 {offsets = [0, 0], sizes = [2, 32], strides = [1, 1]} : vector<2x128xf32> to vector<2x32xf32>
    %281 = vector.extract_strided_slice %278 {offsets = [0, 32], sizes = [2, 32], strides = [1, 1]} : vector<2x128xf32> to vector<2x32xf32>
    %282 = vector.extract_strided_slice %279 {offsets = [0, 64], sizes = [2, 32], strides = [1, 1]} : vector<2x128xf32> to vector<2x32xf32>
    %283 = vector.extract_strided_slice %278 {offsets = [0, 96], sizes = [2, 32], strides = [1, 1]} : vector<2x128xf32> to vector<2x32xf32>
    %284 = arith.mulf %281, %266 : vector<2x32xf32>
    %285 = arith.mulf %280, %282 : vector<2x32xf32>
    %286 = arith.addf %284, %285 : vector<2x32xf32>
    %287 = math.tanh %286 : vector<2x32xf32>
    %288 = arith.mulf %283, %287 : vector<2x32xf32>
    %c8_119 = arith.constant 8 : index
    %c0_120 = arith.constant 0 : index
    %289 = vector.load %arg15[%c8_119, %c0_120] : memref<16x32xf32, #tpu.memory_space<vmem>>, vector<2x32xf32>
    tpu.vector_store %arg15[%c8_119, %c0_120], %288 {strides = array<i32>} : memref<16x32xf32, #tpu.memory_space<vmem>>, vector<2x32xf32>,
    %c10_121 = arith.constant 10 : index
    %c0_122 = arith.constant 0 : index
    %290 = vector.load %arg14[%c10_121, %c0_122] : memref<16x128xf32, #tpu.memory_space<vmem>>, vector<2x128xf32>
    %cst_123 = arith.constant dense<0.000000e+00> : vector<2x128xf32>
    %291 = tpu.matmul %288, %179, %cst_123 {dimension_numbers = #tpu.dot_dimension_numbers<[1], [0], [0], [1], [0, 0, 1, 1], [], []>} : vector<2x32xf32>, vector<32x128xf32>, vector<2x128xf32> -> vector<2x128xf32>
    %292 = arith.addf %290, %291 : vector<2x128xf32>
    %cst_124 = arith.constant 0.000000e+00 : f32
    %293 = vector.broadcast %cst_124 : f32 to vector<2x128xf32>
    %294 = arith.subf %293, %292 : vector<2x128xf32>
    %295 = math.exp %294 : vector<2x128xf32>
    %cst_125 = arith.constant 1.000000e+00 : f32
    %296 = vector.broadcast %cst_125 : f32 to vector<2x128xf32>
    %297 = arith.addf %296, %295 : vector<2x128xf32>
    %298 = tpu.reciprocal %297 {approx = true} : vector<2x128xf32> -> vector<2x128xf32>
    %299 = math.tanh %292 : vector<2x128xf32>
    %300 = vector.extract_strided_slice %298 {offsets = [0, 0], sizes = [2, 32], strides = [1, 1]} : vector<2x128xf32> to vector<2x32xf32>
    %301 = vector.extract_strided_slice %298 {offsets = [0, 32], sizes = [2, 32], strides = [1, 1]} : vector<2x128xf32> to vector<2x32xf32>
    %302 = vector.extract_strided_slice %299 {offsets = [0, 64], sizes = [2, 32], strides = [1, 1]} : vector<2x128xf32> to vector<2x32xf32>
    %303 = vector.extract_strided_slice %298 {offsets = [0, 96], sizes = [2, 32], strides = [1, 1]} : vector<2x128xf32> to vector<2x32xf32>
    %304 = arith.mulf %301, %286 : vector<2x32xf32>
    %305 = arith.mulf %300, %302 : vector<2x32xf32>
    %306 = arith.addf %304, %305 : vector<2x32xf32>
    %307 = math.tanh %306 : vector<2x32xf32>
    %308 = arith.mulf %303, %307 : vector<2x32xf32>
    %c10_126 = arith.constant 10 : index
    %c0_127 = arith.constant 0 : index
    %309 = vector.load %arg15[%c10_126, %c0_127] : memref<16x32xf32, #tpu.memory_space<vmem>>, vector<2x32xf32>
    tpu.vector_store %arg15[%c10_126, %c0_127], %308 {strides = array<i32>} : memref<16x32xf32, #tpu.memory_space<vmem>>, vector<2x32xf32>,
    %c12_128 = arith.constant 12 : index
    %c0_129 = arith.constant 0 : index
    %310 = vector.load %arg14[%c12_128, %c0_129] : memref<16x128xf32, #tpu.memory_space<vmem>>, vector<2x128xf32>
    %cst_130 = arith.constant dense<0.000000e+00> : vector<2x128xf32>
    %311 = tpu.matmul %308, %179, %cst_130 {dimension_numbers = #tpu.dot_dimension_numbers<[1], [0], [0], [1], [0, 0, 1, 1], [], []>} : vector<2x32xf32>, vector<32x128xf32>, vector<2x128xf32> -> vector<2x128xf32>
    %312 = arith.addf %310, %311 : vector<2x128xf32>
    %cst_131 = arith.constant 0.000000e+00 : f32
    %313 = vector.broadcast %cst_131 : f32 to vector<2x128xf32>
    %314 = arith.subf %313, %312 : vector<2x128xf32>
    %315 = math.exp %314 : vector<2x128xf32>
    %cst_132 = arith.constant 1.000000e+00 : f32
    %316 = vector.broadcast %cst_132 : f32 to vector<2x128xf32>
    %317 = arith.addf %316, %315 : vector<2x128xf32>
    %318 = tpu.reciprocal %317 {approx = true} : vector<2x128xf32> -> vector<2x128xf32>
    %319 = math.tanh %312 : vector<2x128xf32>
    %320 = vector.extract_strided_slice %318 {offsets = [0, 0], sizes = [2, 32], strides = [1, 1]} : vector<2x128xf32> to vector<2x32xf32>
    %321 = vector.extract_strided_slice %318 {offsets = [0, 32], sizes = [2, 32], strides = [1, 1]} : vector<2x128xf32> to vector<2x32xf32>
    %322 = vector.extract_strided_slice %319 {offsets = [0, 64], sizes = [2, 32], strides = [1, 1]} : vector<2x128xf32> to vector<2x32xf32>
    %323 = vector.extract_strided_slice %318 {offsets = [0, 96], sizes = [2, 32], strides = [1, 1]} : vector<2x128xf32> to vector<2x32xf32>
    %324 = arith.mulf %321, %306 : vector<2x32xf32>
    %325 = arith.mulf %320, %322 : vector<2x32xf32>
    %326 = arith.addf %324, %325 : vector<2x32xf32>
    %327 = math.tanh %326 : vector<2x32xf32>
    %328 = arith.mulf %323, %327 : vector<2x32xf32>
    %c12_133 = arith.constant 12 : index
    %c0_134 = arith.constant 0 : index
    %329 = vector.load %arg15[%c12_133, %c0_134] : memref<16x32xf32, #tpu.memory_space<vmem>>, vector<2x32xf32>
    tpu.vector_store %arg15[%c12_133, %c0_134], %328 {strides = array<i32>} : memref<16x32xf32, #tpu.memory_space<vmem>>, vector<2x32xf32>,
    %c14_135 = arith.constant 14 : index
    %c0_136 = arith.constant 0 : index
    %330 = vector.load %arg14[%c14_135, %c0_136] : memref<16x128xf32, #tpu.memory_space<vmem>>, vector<2x128xf32>
    %cst_137 = arith.constant dense<0.000000e+00> : vector<2x128xf32>
    %331 = tpu.matmul %328, %179, %cst_137 {dimension_numbers = #tpu.dot_dimension_numbers<[1], [0], [0], [1], [0, 0, 1, 1], [], []>} : vector<2x32xf32>, vector<32x128xf32>, vector<2x128xf32> -> vector<2x128xf32>
    %332 = arith.addf %330, %331 : vector<2x128xf32>
    %cst_138 = arith.constant 0.000000e+00 : f32
    %333 = vector.broadcast %cst_138 : f32 to vector<2x128xf32>
    %334 = arith.subf %333, %332 : vector<2x128xf32>
    %335 = math.exp %334 : vector<2x128xf32>
    %cst_139 = arith.constant 1.000000e+00 : f32
    %336 = vector.broadcast %cst_139 : f32 to vector<2x128xf32>
    %337 = arith.addf %336, %335 : vector<2x128xf32>
    %338 = tpu.reciprocal %337 {approx = true} : vector<2x128xf32> -> vector<2x128xf32>
    %339 = math.tanh %332 : vector<2x128xf32>
    %340 = vector.extract_strided_slice %338 {offsets = [0, 0], sizes = [2, 32], strides = [1, 1]} : vector<2x128xf32> to vector<2x32xf32>
    %341 = vector.extract_strided_slice %338 {offsets = [0, 32], sizes = [2, 32], strides = [1, 1]} : vector<2x128xf32> to vector<2x32xf32>
    %342 = vector.extract_strided_slice %339 {offsets = [0, 64], sizes = [2, 32], strides = [1, 1]} : vector<2x128xf32> to vector<2x32xf32>
    %343 = vector.extract_strided_slice %338 {offsets = [0, 96], sizes = [2, 32], strides = [1, 1]} : vector<2x128xf32> to vector<2x32xf32>
    %344 = arith.mulf %341, %326 : vector<2x32xf32>
    %345 = arith.mulf %340, %342 : vector<2x32xf32>
    %346 = arith.addf %344, %345 : vector<2x32xf32>
    %347 = math.tanh %346 : vector<2x32xf32>
    %348 = arith.mulf %343, %347 : vector<2x32xf32>
    %c14_140 = arith.constant 14 : index
    %c0_141 = arith.constant 0 : index
    %349 = vector.load %arg15[%c14_140, %c0_141] : memref<16x32xf32, #tpu.memory_space<vmem>>, vector<2x32xf32>
    tpu.vector_store %arg15[%c14_140, %c0_141], %348 {strides = array<i32>} : memref<16x32xf32, #tpu.memory_space<vmem>>, vector<2x32xf32>,
    %c1_142 = arith.constant 1 : index
    %c0_143 = arith.constant 0 : index
    %c0_144 = arith.constant 0 : index
    %350 = vector.load %arg12[%c1_142, %c0_143, %c0_144] : memref<2x2x32xf32, #tpu.memory_space<vmem>>, vector<1x2x32xf32>
    %351 = vector.shape_cast %350 : vector<1x2x32xf32> to vector<2x32xf32>
    %352 = vector.shape_cast %348 : vector<2x32xf32> to vector<1x2x32xf32>
    tpu.vector_store %arg12[%c1_142, %c0_143, %c0_144], %352 {strides = array<i32>} : memref<2x2x32xf32, #tpu.memory_space<vmem>>, vector<1x2x32xf32>,
    %c1_145 = arith.constant 1 : index
    %c0_146 = arith.constant 0 : index
    %c0_147 = arith.constant 0 : index
    %353 = vector.load %arg13[%c1_145, %c0_146, %c0_147] : memref<2x2x32xf32, #tpu.memory_space<vmem>>, vector<1x2x32xf32>
    %354 = vector.shape_cast %353 : vector<1x2x32xf32> to vector<2x32xf32>
    %355 = vector.shape_cast %346 : vector<2x32xf32> to vector<1x2x32xf32>
    tpu.vector_store %arg13[%c1_145, %c0_146, %c0_147], %355 {strides = array<i32>} : memref<2x2x32xf32, #tpu.memory_space<vmem>>, vector<1x2x32xf32>,
    %c0_148 = arith.constant 0 : index
    %c0_149 = arith.constant 0 : index
    %356 = vector.load %arg15[%c0_148, %c0_149] : memref<16x32xf32, #tpu.memory_space<vmem>>, vector<16x32xf32>
    %c0_150 = arith.constant 0 : index
    %c0_151 = arith.constant 0 : index
    %357 = vector.load %arg9[%c0_150, %c0_151] : memref<32x4xf32, #tpu.memory_space<vmem>>, vector<32x4xf32>
    %cst_152 = arith.constant dense<0.000000e+00> : vector<16x4xf32>
    %358 = tpu.matmul %356, %357, %cst_152 {dimension_numbers = #tpu.dot_dimension_numbers<[1], [0], [0], [1], [0, 0, 1, 1], [], []>} : vector<16x32xf32>, vector<32x4xf32>, vector<16x4xf32> -> vector<16x4xf32>
    %c0_153 = arith.constant 0 : index
    %c0_154 = arith.constant 0 : index
    %359 = vector.load %arg10[%c0_153, %c0_154] : memref<1x4xf32, #tpu.memory_space<vmem>>, vector<1x4xf32>
    %360 = vector.broadcast %359 : vector<1x4xf32> to vector<16x4xf32>
    %361 = arith.addf %358, %360 : vector<16x4xf32>
    %c0_155 = arith.constant 0 : index
    %c0_156 = arith.constant 0 : index
    %362 = vector.load %arg11[%c0_155, %c0_156] : memref<16x4xf32, #tpu.memory_space<vmem>>, vector<16x4xf32>
    tpu.vector_store %arg11[%c0_155, %c0_156], %361 {strides = array<i32>} : memref<16x4xf32, #tpu.memory_space<vmem>>, vector<16x4xf32>,
    return
  }
}

</mosaic_0001>

<bundles_post_ra>
// kernel: decoder_forward.1
= control target key start
LH: loop header
LB: loop body
LE: loop exit
PB: predicated region body
PF: predicated region fallthrough
CT: control target
= control target key end

     0   :  { %19 = vsyncpa [#allocation5], 0  ;;  %vm64_vm0 = vcmask 1043456   ;;  %vm57_vm1 = vcmask 31744   ;;  %v2664_v6 = vmov 0.0|0.0   ;;  %s3073_s0 = inlined_call_operand.vmem [shape: f32[16,4], index: 0, kind: input, shape index: {}]   ;;  %s3074_s1 = inlined_call_operand.vmem [shape: f32[2,2,32], index: 1, kind: input, shape index: {}]   ;;  %s3075_s2 = inlined_call_operand.vmem [shape: f32[2,2,32], index: 2, kind: input, shape index: {}]   ;;  %s3076_s3 = inlined_call_operand.vmem [shape: f32[4,128], index: 3, kind: input, shape index: {}]   ;;  %s3077_s4 = inlined_call_operand.vmem [shape: f32[32,128], index: 4, kind: input, shape index: {}]   ;;  %s3078_s5 = inlined_call_operand.vmem [shape: f32[1,128], index: 5, kind: input, shape index: {}]   ;;  %s3079_s6 = inlined_call_operand.vmem [shape: f32[32,128], index: 6, kind: input, shape index: {}]   ;;  %s3080_s7 = inlined_call_operand.vmem [shape: f32[32,128], index: 7, kind: input, shape index: {}]   ;;  %s3081_s8 = inlined_call_operand.vmem [shape: f32[1,128], index: 8, kind: input, shape index: {}]   ;;  %s3082_s9 = inlined_call_operand.vmem [shape: f32[32,4], index: 9, kind: input, shape index: {}]   ;;  %s3083_s10 = inlined_call_operand.vmem [shape: f32[1,4], index: 10, kind: input, shape index: {}]   ;;  %s3084_s11 = inlined_call_operand.vmem [shape: f32[16,4], index: 11, kind: output, shape index: {0}]   ;;  %s3085_s12 = inlined_call_operand.hbm [shape: f32[2,2,32], index: 12, kind: output, shape index: {1}]   ;;  %s3086_s13 = inlined_call_operand.hbm [shape: f32[2,2,32], index: 13, kind: output, shape index: {2}]  }
   0x1   :  { %v43_v0 = vld [vmem:[%s3076_s3] sm:$0xf]  ;;  %v50_v2 = vld [vmem:[%s3073_s0 + $0x8] sm:$0xff]  ;;  %v46_v5 = vld [vmem:[%s3077_s4 + $0x10] sm:$0xff]  ;;  %2367 = vmatprep.subr.bf16.mxu1 %v2664_v6 }
   0x2   :  { %v49_v1 = vld [vmem:[%s3073_s0] sm:$0xff]  ;;  %2164 = vmatprep.subr.msk.mxu0 %vm64_vm0, %v43_v0  ;;  %v45_v4 = vld [vmem:[%s3077_s4 + $0x8] sm:$0xff]  ;;  %v47_v8 = vld [vmem:[%s3077_s4 + $0x18] sm:$0xff] }
   0x3   :  { %2166 = vmatprep.mubr.msk.f32.mxu0 %vm57_vm1, %v49_v1  ;;  %v44_v3 = vld [vmem:[%s3077_s4] sm:$0xff]  ;;  %2165 = vmatpush3.msk.msra.mxu0 %vm64_vm0, %v43_v0 }
   0x4   :  { %v2763_v7 = vpack.c.bf16 %v45_v4, %v44_v3 }
   0x5   :  { %20 = vsyncpa [#allocation7], 0  ;;  %2167 = vmatmul.mubr.msk.f32.vlgmr.msra.gmra.mrb[0].mxu0 %vm57_vm1, %v50_v2  ;;  %vm2665_vm2 = vmmov 0   ;;  %v2666_v9 = vmov 0.0   ;;  %v2772_v10 = vpack.c.bf16 %v47_v8, %v46_v5  ;;  %2373 = vmatprep.subr.bf16.mxu0 %v2664_v6  ;;  %v145_v11 = vld [vmem:[%s3074_s1] sm:$0x3] }
   0x6   :  { %2177 = vmatprep.mubr.msk.f32.mxu1 %vm2665_vm2, %v2666_v9  ;;  %2369 = vmatpush3.bf16.msra.mxu1 %v2763_v7  ;;  %vm148_vm3 = vcmask 261120   ;;  %v2041_v12 = vld [vmem:[%s3078_s5] ss:$0 sm:$0xff]  ;;  %s2667_s23 = smov 64   ;;  %s2668_s5 = smov 32   ;;  %vm254_vm4 = vcmask 254976  }
   0x7   :  { %2370 = vmatprep.subr.bf16.mxu1 %v2664_v6  ;;  %2375 = vmatpush3.bf16.msra.mxu0 %v2763_v7  ;;  %v146_v22 = vld [vmem:[%s3075_s2] sm:$0x3]  ;;  %s2671_s16 = smov [#allocation6]  }
   0x8   :  { %2376 = vmatprep.subr.bf16.mxu0 %v2664_v6  ;;  %2188 = vmatprep.mubr.msk.f32.mxu0 %vm2665_vm2, %v2666_v9  ;;  %s2024_s17 = sshll.u32 %s2671_s16, 4  ;;  %s2025_s17 = int_to_ptr.vmem [resolvable:$true] %s2024_s17 }
   0xa   :  { %2372 = vmatpush3.bf16.msra.mxu1 %v2772_v10 }
   0xb   :  { %2378 = vmatpush3.bf16.msra.mxu0 %v2772_v10  ;;  %2379 = vmatprep.subr.bf16.mxu1 %v2664_v6 }
   0xc   :  { %2385 = vmatprep.subr.bf16.mxu0 %v2664_v6 }
   0xd   :  { %2178 = vmatmul.mubr.msk.f32.vlgmr.msra.gmra.mrb[0].mxu1 %vm148_vm3, %v145_v11 }
   0xe   :  { %2381 = vmatpush3.bf16.msra.mxu1 %v2763_v7  ;;  %2199 = vmatprep.mubr.msk.f32.mxu1 %vm2665_vm2, %v2666_v9 }
   0xf   :  { %2382 = vmatprep.subr.bf16.mxu1 %v2664_v6 }
  0x12   :  { %2384 = vmatpush3.bf16.msra.mxu1 %v2772_v10 }
  0x13   :  { %2391 = vmatprep.subr.bf16.mxu1 %v2664_v6 }
  0xd8   :  { %v2168_v13 = vpop.f32.mrb[0].mxu0 }
  0xd9   :  { %v140_v14 = vadd.f32 %v2168_v13, %v2041_v12  ;;  %v134_v15 = vpop.f32.mrb[1].mxu0 }
  0xda   :  { %v135_v16 = vadd.f32 %v2041_v12, %v134_v15 }
  0xdb   :  { %144 = vst [vmem:[#allocation2 + $0x8] sm:$0xff] %v140_v14 }
  0xdc   :  { %143 = vst [vmem:[#allocation2] sm:$0xff] %v135_v16 }
  0xe0   :  { %v218_v17 = vpop.f32.mrb[0].mxu1 }
  0xe1   :  { %v2179_v18 = vpop.f32.mrb[1].mxu1 }
  0xe3   :  { %v147_v19 = vld [vmem:[#allocation2] sm:$0x3]  ;;  %v256_v38 = vld [vmem:[#allocation2 + $0x2] sm:$0x3]  ;;  %v358_v57 = vld [vmem:[#allocation2 + $0x4] sm:$0x3] }
  0xe4   :  { %v222_v20 = vadd.f32 %v218_v17, %v147_v19  ;;  %v460_v16 = vld [vmem:[#allocation2 + $0x6] sm:$0x3] }
  0xe6   :  { %2488 = vtanh.f32 %v222_v20  ;;  %v223_v23 = vsub.f32 0.0, %v222_v20 }
  0xe8   :  { %v224_v24 = vmul.f32 1.442695, %v223_v23 }
  0xea   :  { %2490 = vpow2.f32 %v224_v24 }
  0xf0   :  { %v2489_v21 = vpop.eup %2488 }
  0xf1   :  { %235 = vrot.lane.b32.xlu0 %v2489_v21, %s2667_s23 }
  0xf4   :  { %v2491_v25 = vpop.eup %2490 }
  0xf5   :  { %230 = vrot.lane.b32.xlu0 %v146_v22, %s2668_s5  ;;  %v226_v26 = vadd.f32 1.0, %v2491_v25 }
  0xf7   :  { %2492 = vrcp.f32 %v226_v26 }
 0x101   :  { %v2493_v27 = vpop.eup %2492 }
 0x163   :  { %v236_v28 = vpop.permute.xlu0 %235 }
 0x164   :  { %v238_v29 = vmul.f32 %v2493_v27, %v236_v28 }
 0x166   :  { %240 = vrot.lane.b32.xlu1 %v238_v29, %s2668_s5 }
 0x167   :  { %v231_v30 = vpop.permute.xlu0 %230 }
 0x168   :  { %v233_v31 = vmul.f32 %v2493_v27, %v231_v30 }
 0x1d8   :  { %v241_v32 = vpop.permute.xlu1 %240 }
 0x1d9   :  { %v243_v33 = vadd.f32 %v241_v32, %v233_v31 }
 0x1db   :  { %2494 = vtanh.f32 %v243_v33 }
 0x1e5   :  { %v2495_v34 = vpop.eup %2494 }
 0x1e6   :  { %246 = vrot.lane.b32.xlu1 %v2495_v34, %s2667_s23 }
 0x258   :  { %v247_v35 = vpop.permute.xlu1 %246 }
 0x259   :  { %v249_v36 = vmul.f32 %v2493_v27, %v247_v35  ;;  %v562_v35 = vld [vmem:[#allocation2 + $0x8] sm:$0x3] }
 0x25b   :  { %251 = vrot.lane.b32.xlu0 %v249_v36, %s2668_s5 }
 0x2cd   :  { %v252_v37 = vpop.permute.xlu0 %251 }
 0x2ce   :  { %255 = vst.msk [vmem:[#allocation3] sm:$0x3] %vm254_vm4, %v252_v37  ;;  %2189 = vmatmul.mubr.msk.f32.vlgmr.msra.gmra.mrb[2].mxu0 %vm148_vm3, %v252_v37 }
 0x2cf   :  { %2387 = vmatpush3.bf16.msra.mxu0 %v2763_v7  ;;  %2210 = vmatprep.mubr.msk.f32.mxu0 %vm2665_vm2, %v2666_v9 }
 0x2d0   :  { %2388 = vmatprep.subr.bf16.mxu0 %v2664_v6 }
 0x2d3   :  { %2390 = vmatpush3.bf16.msra.mxu0 %v2772_v10 }
 0x2d4   :  { %2397 = vmatprep.subr.bf16.mxu0 %v2664_v6 }
 0x3a1   :  { %v325_v39 = vpop.f32.mrb[2].mxu0 }
 0x3a2   :  { %v329_v40 = vadd.f32 %v325_v39, %v256_v38  ;;  %v2190_v41 = vpop.f32.mrb[3].mxu0 }
 0x3a4   :  { %2496 = vtanh.f32 %v329_v40  ;;  %v330_v43 = vsub.f32 0.0, %v329_v40 }
 0x3a6   :  { %v331_v44 = vmul.f32 1.442695, %v330_v43 }
 0x3a8   :  { %2498 = vpow2.f32 %v331_v44 }
 0x3ae   :  { %v2497_v42 = vpop.eup %2496 }
 0x3af   :  { %338 = vrot.lane.b32.xlu1 %v2497_v42, %s2667_s23 }
 0x3b2   :  { %v2499_v45 = vpop.eup %2498 }
 0x3b3   :  { %v333_v46 = vadd.f32 1.0, %v2499_v45 }
 0x3b5   :  { %2500 = vrcp.f32 %v333_v46 }
 0x3bf   :  { %v2501_v47 = vpop.eup %2500 }
 0x3c0   :  { %v336_v50 = vmul.f32 %v2501_v47, %v243_v33 }
 0x421   :  { %v339_v48 = vpop.permute.xlu1 %338 }
 0x422   :  { %v341_v49 = vmul.f32 %v2501_v47, %v339_v48 }
 0x424   :  { %343 = vrot.lane.b32.xlu0 %v341_v49, %s2668_s5 }
 0x496   :  { %v344_v51 = vpop.permute.xlu0 %343 }
 0x497   :  { %v346_v52 = vadd.f32 %v344_v51, %v336_v50 }
 0x499   :  { %2502 = vtanh.f32 %v346_v52 }
 0x4a3   :  { %v2503_v53 = vpop.eup %2502 }
 0x4a4   :  { %349 = vrot.lane.b32.xlu1 %v2503_v53, %s2667_s23 }
 0x516   :  { %v350_v54 = vpop.permute.xlu1 %349 }
 0x517   :  { %v352_v55 = vmul.f32 %v2501_v47, %v350_v54  ;;  %v664_v54 = vld [vmem:[#allocation2 + $0xa] sm:$0x3] }
 0x519   :  { %354 = vrot.lane.b32.xlu0 %v352_v55, %s2668_s5 }
 0x58b   :  { %v355_v56 = vpop.permute.xlu0 %354 }
 0x58c   :  { %357 = vst.msk [vmem:[#allocation3 + $0x2] sm:$0x3] %vm254_vm4, %v355_v56  ;;  %2200 = vmatmul.mubr.msk.f32.vlgmr.msra.gmra.mrb[2].mxu1 %vm148_vm3, %v355_v56 }
 0x58d   :  { %2393 = vmatpush3.bf16.msra.mxu1 %v2763_v7  ;;  %2221 = vmatprep.mubr.msk.f32.mxu1 %vm2665_vm2, %v2666_v9 }
 0x58e   :  { %2394 = vmatprep.subr.bf16.mxu1 %v2664_v6 }
 0x591   :  { %2396 = vmatpush3.bf16.msra.mxu1 %v2772_v10 }
 0x592   :  { %2403 = vmatprep.subr.bf16.mxu1 %v2664_v6 }
 0x65f   :  { %v427_v58 = vpop.f32.mrb[2].mxu1 }
 0x660   :  { %v431_v59 = vadd.f32 %v427_v58, %v358_v57  ;;  %v2201_v60 = vpop.f32.mrb[3].mxu1 }
 0x662   :  { %2504 = vtanh.f32 %v431_v59  ;;  %v432_v62 = vsub.f32 0.0, %v431_v59 }
 0x664   :  { %v433_v63 = vmul.f32 1.442695, %v432_v62 }
 0x666   :  { %2506 = vpow2.f32 %v433_v63 }
 0x66c   :  { %v2505_v61 = vpop.eup %2504 }
 0x66d   :  { %440 = vrot.lane.b32.xlu1 %v2505_v61, %s2667_s23 }
 0x670   :  { %v2507_v0 = vpop.eup %2506 }
 0x671   :  { %v435_v1 = vadd.f32 1.0, %v2507_v0 }
 0x673   :  { %2508 = vrcp.f32 %v435_v1 }
 0x67d   :  { %v2509_v2 = vpop.eup %2508 }
 0x67e   :  { %v438_v5 = vmul.f32 %v2509_v2, %v346_v52 }
 0x6df   :  { %v441_v3 = vpop.permute.xlu1 %440 }
 0x6e0   :  { %v443_v4 = vmul.f32 %v2509_v2, %v441_v3 }
 0x6e2   :  { %445 = vrot.lane.b32.xlu0 %v443_v4, %s2668_s5 }
 0x754   :  { %v446_v8 = vpop.permute.xlu0 %445 }
 0x755   :  { %v448_v11 = vadd.f32 %v446_v8, %v438_v5 }
 0x757   :  { %2510 = vtanh.f32 %v448_v11 }
 0x761   :  { %v2511_v12 = vpop.eup %2510 }
 0x762   :  { %451 = vrot.lane.b32.xlu1 %v2511_v12, %s2667_s23  ;;  %v766_v12 = vld [vmem:[#allocation2 + $0xc] sm:$0x3] }
 0x7d4   :  { %v452_v13 = vpop.permute.xlu1 %451 }
 0x7d5   :  { %v454_v14 = vmul.f32 %v2509_v2, %v452_v13 }
 0x7d7   :  { %456 = vrot.lane.b32.xlu0 %v454_v14, %s2668_s5 }
 0x849   :  { %v457_v15 = vpop.permute.xlu0 %456 }
 0x84a   :  { %459 = vst.msk [vmem:[#allocation3 + $0x4] sm:$0x3] %vm254_vm4, %v457_v15  ;;  %2211 = vmatmul.mubr.msk.f32.vlgmr.msra.gmra.mrb[4].mxu0 %vm148_vm3, %v457_v15 }
 0x84b   :  { %2399 = vmatpush3.bf16.msra.mxu0 %v2763_v7  ;;  %2232 = vmatprep.mubr.msk.f32.mxu0 %vm2665_vm2, %v2666_v9 }
 0x84c   :  { %2400 = vmatprep.subr.bf16.mxu0 %v2664_v6 }
 0x84f   :  { %2402 = vmatpush3.bf16.msra.mxu0 %v2772_v10 }
 0x850   :  { %2409 = vmatprep.subr.bf16.mxu0 %v2664_v6 }
 0x91d   :  { %v529_v17 = vpop.f32.mrb[4].mxu0 }
 0x91e   :  { %v533_v18 = vadd.f32 %v529_v17, %v460_v16  ;;  %v2212_v19 = vpop.f32.mrb[5].mxu0 }
 0x920   :  { %2512 = vtanh.f32 %v533_v18  ;;  %v534_v21 = vsub.f32 0.0, %v533_v18 }
 0x922   :  { %v535_v22 = vmul.f32 1.442695, %v534_v21 }
 0x924   :  { %2514 = vpow2.f32 %v535_v22 }
 0x92a   :  { %v2513_v20 = vpop.eup %2512 }
 0x92b   :  { %542 = vrot.lane.b32.xlu1 %v2513_v20, %s2667_s23 }
 0x92e   :  { %v2515_v23 = vpop.eup %2514 }
 0x92f   :  { %v537_v24 = vadd.f32 1.0, %v2515_v23 }
 0x931   :  { %2516 = vrcp.f32 %v537_v24 }
 0x93b   :  { %v2517_v25 = vpop.eup %2516 }
 0x93c   :  { %v540_v28 = vmul.f32 %v2517_v25, %v448_v11 }
 0x99d   :  { %v543_v26 = vpop.permute.xlu1 %542 }
 0x99e   :  { %v545_v27 = vmul.f32 %v2517_v25, %v543_v26 }
 0x9a0   :  { %547 = vrot.lane.b32.xlu0 %v545_v27, %s2668_s5 }
 0xa12   :  { %v548_v29 = vpop.permute.xlu0 %547 }
 0xa13   :  { %v550_v30 = vadd.f32 %v548_v29, %v540_v28 }
 0xa15   :  { %2518 = vtanh.f32 %v550_v30 }
 0xa1f   :  { %v2519_v31 = vpop.eup %2518 }
 0xa20   :  { %553 = vrot.lane.b32.xlu1 %v2519_v31, %s2667_s23  ;;  %v868_v31 = vld [vmem:[#allocation2 + $0xe] sm:$0x3] }
 0xa92   :  { %v554_v32 = vpop.permute.xlu1 %553 }
 0xa93   :  { %v556_v33 = vmul.f32 %v2517_v25, %v554_v32 }
 0xa95   :  { %558 = vrot.lane.b32.xlu0 %v556_v33, %s2668_s5 }
 0xb07   :  { %v559_v34 = vpop.permute.xlu0 %558 }
 0xb08   :  { %561 = vst.msk [vmem:[#allocation3 + $0x6] sm:$0x3] %vm254_vm4, %v559_v34  ;;  %2222 = vmatmul.mubr.msk.f32.vlgmr.msra.gmra.mrb[4].mxu1 %vm148_vm3, %v559_v34 }
 0xb09   :  { %2405 = vmatpush3.bf16.msra.mxu1 %v2763_v7  ;;  %2243 = vmatprep.mubr.msk.f32.mxu1 %vm2665_vm2, %v2666_v9 }
 0xb0a   :  { %2406 = vmatprep.subr.bf16.mxu1 %v2664_v6 }
 0xb0d   :  { %2408 = vmatpush3.bf16.msra.mxu1 %v2772_v10 }
 0xb0f   :  { %v985_v11 = vld [vmem:[#allocation3] sm:$0xff] }
 0xbdb   :  { %v631_v36 = vpop.f32.mrb[4].mxu1 }
 0xbdc   :  { %v635_v37 = vadd.f32 %v631_v36, %v562_v35  ;;  %v2223_v38 = vpop.f32.mrb[5].mxu1 }
 0xbde   :  { %2520 = vtanh.f32 %v635_v37  ;;  %v636_v40 = vsub.f32 0.0, %v635_v37 }
 0xbe0   :  { %v637_v41 = vmul.f32 1.442695, %v636_v40 }
 0xbe2   :  { %2522 = vpow2.f32 %v637_v41 }
 0xbe8   :  { %v2521_v39 = vpop.eup %2520 }
 0xbe9   :  { %644 = vrot.lane.b32.xlu1 %v2521_v39, %s2667_s23 }
 0xbec   :  { %v2523_v42 = vpop.eup %2522 }
 0xbed   :  { %v639_v43 = vadd.f32 1.0, %v2523_v42 }
 0xbef   :  { %2524 = vrcp.f32 %v639_v43 }
 0xbf9   :  { %v2525_v44 = vpop.eup %2524 }
 0xbfa   :  { %v642_v47 = vmul.f32 %v2525_v44, %v550_v30 }
 0xc5b   :  { %v645_v45 = vpop.permute.xlu1 %644 }
 0xc5c   :  { %v647_v46 = vmul.f32 %v2525_v44, %v645_v45 }
 0xc5e   :  { %649 = vrot.lane.b32.xlu0 %v647_v46, %s2668_s5 }
 0xcd0   :  { %v650_v48 = vpop.permute.xlu0 %649 }
 0xcd1   :  { %v652_v49 = vadd.f32 %v650_v48, %v642_v47  ;;  %v976_v47 = vld [vmem:[%s3079_s6] sm:$0xff]  ;;  %v977_v48 = vld [vmem:[%s3079_s6 + $0x8] sm:$0xff] }
 0xcd3   :  { %2526 = vtanh.f32 %v652_v49 }
 0xcdd   :  { %v2527_v50 = vpop.eup %2526 }
 0xcde   :  { %655 = vrot.lane.b32.xlu1 %v2527_v50, %s2667_s23  ;;  %v978_v50 = vld [vmem:[%s3079_s6 + $0x10] sm:$0xff] }
 0xd50   :  { %v656_v51 = vpop.permute.xlu1 %655 }
 0xd51   :  { %v658_v52 = vmul.f32 %v2525_v44, %v656_v51  ;;  %v979_v51 = vld [vmem:[%s3079_s6 + $0x18] sm:$0xff] }
 0xd53   :  { %660 = vrot.lane.b32.xlu0 %v658_v52, %s2668_s5  ;;  %v2419_v52 = vpack.c.bf16 %v979_v51, %v978_v50 }
 0xdc5   :  { %v661_v53 = vpop.permute.xlu0 %660 }
 0xdc6   :  { %663 = vst.msk [vmem:[#allocation3 + $0x8] sm:$0x3] %vm254_vm4, %v661_v53  ;;  %2233 = vmatmul.mubr.msk.f32.vlgmr.msra.gmra.mrb[6].mxu0 %vm148_vm3, %v661_v53  ;;  %v980_v53 = vld [vmem:[%s3080_s7] sm:$0xff] }
 0xdc7   :  { %2411 = vmatpush3.bf16.msra.mxu0 %v2763_v7  ;;  %2254 = vmatprep.mubr.msk.f32.mxu0 %vm2665_vm2, %v2666_v9 }
 0xdc8   :  { %2412 = vmatprep.subr.bf16.mxu0 %v2664_v6 }
 0xdcb   :  { %2414 = vmatpush3.bf16.msra.mxu0 %v2772_v10 }
 0xdcc   :  { %2423 = vmatprep.subr.bf16.mxu0 %v2664_v6 }
 0xe99   :  { %v733_v55 = vpop.f32.mrb[6].mxu0 }
 0xe9a   :  { %v737_v56 = vadd.f32 %v733_v55, %v664_v54  ;;  %v2234_v57 = vpop.f32.mrb[7].mxu0  ;;  %v981_v54 = vld [vmem:[%s3080_s7 + $0x8] sm:$0xff]  ;;  %v982_v55 = vld [vmem:[%s3080_s7 + $0x10] sm:$0xff] }
 0xe9b   :  { %v983_v57 = vld [vmem:[%s3080_s7 + $0x18] sm:$0xff]  ;;  %s2669_s7 = smov 96  }
 0xe9c   :  { %2528 = vtanh.f32 %v737_v56  ;;  %v738_v59 = vsub.f32 0.0, %v737_v56  ;;  %v2903_v56 = vpack.c.bf16 %v981_v54, %v980_v53 }
 0xe9e   :  { %v739_v60 = vmul.f32 1.442695, %v738_v59 }
 0xea0   :  { %2530 = vpow2.f32 %v739_v60  ;;  %v2909_v60 = vpack.c.bf16 %v983_v57, %v982_v55 }
 0xea6   :  { %v2529_v58 = vpop.eup %2528 }
 0xea7   :  { %746 = vrot.lane.b32.xlu1 %v2529_v58, %s2667_s23 }
 0xeaa   :  { %v2531_v7 = vpop.eup %2530 }
 0xeab   :  { %v741_v61 = vadd.f32 1.0, %v2531_v7  ;;  %v2057_v7 = vld [vmem:[%s3075_s2 + $0x2] sm:$0x3] }
 0xead   :  { %2532 = vrcp.f32 %v741_v61  ;;  %v2056_v61 = vld [vmem:[%s3074_s1 + $0x2] sm:$0x3] }
 0xeb7   :  { %v2533_v62 = vpop.eup %2532 }
 0xeb8   :  { %v744_v10 = vmul.f32 %v2533_v62, %v652_v49  ;;  %v2415_v49 = vpack.c.bf16 %v977_v48, %v976_v47 }
 0xeba   :  { %2416 = vmatprep.subr.bf16.mxu1 %v2415_v49 }
 0xf19   :  { %v747_v63 = vpop.permute.xlu1 %746 }
 0xf1a   :  { %v749_v0 = vmul.f32 %v2533_v62, %v747_v63 }
 0xf1c   :  { %751 = vrot.lane.b32.xlu0 %v749_v0, %s2668_s5 }
 0xf8e   :  { %v752_v1 = vpop.permute.xlu0 %751 }
 0xf8f   :  { %v754_v2 = vadd.f32 %v752_v1, %v744_v10  ;;  %v2053_v1 = vld [vmem:[%s3081_s8] ss:$0 sm:$0xff] }
 0xf91   :  { %2534 = vtanh.f32 %v754_v2 }
 0xf9b   :  { %v2535_v3 = vpop.eup %2534 }
 0xf9c   :  { %757 = vrot.lane.b32.xlu1 %v2535_v3, %s2667_s23 }
0x100e   :  { %v758_v4 = vpop.permute.xlu1 %757 }
0x100f   :  { %v760_v5 = vmul.f32 %v2533_v62, %v758_v4 }
0x1011   :  { %762 = vrot.lane.b32.xlu0 %v760_v5, %s2668_s5 }
0x1083   :  { %v763_v8 = vpop.permute.xlu0 %762 }
0x1084   :  { %765 = vst.msk [vmem:[#allocation3 + $0xa] sm:$0x3] %vm254_vm4, %v763_v8  ;;  %2244 = vmatmul.mubr.msk.f32.vlgmr.msra.gmra.mrb[6].mxu1 %vm148_vm3, %v763_v8 }
0x1085   :  { %2265 = vmatprep.mubr.msk.f32.mxu1 %vm148_vm3, %v985_v11  ;;  %2418 = vmatpush3.bf16.msra.mxu1 %v2415_v49 }
0x1086   :  { %2420 = vmatprep.subr.bf16.mxu1 %v2419_v52 }
0x1089   :  { %2422 = vmatpush3.bf16.msra.mxu1 %v2419_v52 }
0x108a   :  { %2429 = vmatprep.subr.bf16.mxu1 %v2664_v6 }
0x1157   :  { %v835_v13 = vpop.f32.mrb[6].mxu1 }
0x1158   :  { %v839_v14 = vadd.f32 %v835_v13, %v766_v12  ;;  %v2245_v15 = vpop.f32.mrb[7].mxu1 }
0x115a   :  { %2536 = vtanh.f32 %v839_v14  ;;  %v840_v17 = vsub.f32 0.0, %v839_v14 }
0x115c   :  { %v841_v18 = vmul.f32 1.442695, %v840_v17 }
0x115e   :  { %2538 = vpow2.f32 %v841_v18 }
0x1164   :  { %v2537_v16 = vpop.eup %2536 }
0x1165   :  { %848 = vrot.lane.b32.xlu1 %v2537_v16, %s2667_s23 }
0x1168   :  { %v2539_v19 = vpop.eup %2538 }
0x1169   :  { %v843_v20 = vadd.f32 1.0, %v2539_v19 }
0x116b   :  { %2540 = vrcp.f32 %v843_v20 }
0x1175   :  { %v2541_v21 = vpop.eup %2540 }
0x1176   :  { %v846_v24 = vmul.f32 %v2541_v21, %v754_v2 }
0x11d7   :  { %v849_v22 = vpop.permute.xlu1 %848 }
0x11d8   :  { %v851_v23 = vmul.f32 %v2541_v21, %v849_v22 }
0x11da   :  { %853 = vrot.lane.b32.xlu0 %v851_v23, %s2668_s5 }
0x124c   :  { %v854_v25 = vpop.permute.xlu0 %853 }
0x124d   :  { %v856_v26 = vadd.f32 %v854_v25, %v846_v24 }
0x124f   :  { %2542 = vtanh.f32 %v856_v26 }
0x1259   :  { %v2543_v27 = vpop.eup %2542 }
0x125a   :  { %859 = vrot.lane.b32.xlu1 %v2543_v27, %s2667_s23 }
0x12cc   :  { %v860_v28 = vpop.permute.xlu1 %859 }
0x12cd   :  { %v862_v29 = vmul.f32 %v2541_v21, %v860_v28 }
0x12cf   :  { %864 = vrot.lane.b32.xlu0 %v862_v29, %s2668_s5 }
0x1341   :  { %v865_v30 = vpop.permute.xlu0 %864 }
0x1342   :  { %867 = vst.msk [vmem:[#allocation3 + $0xc] sm:$0x3] %vm254_vm4, %v865_v30  ;;  %2255 = vmatmul.mubr.msk.f32.vlgmr.msra.gmra.mrb[8].mxu0 %vm148_vm3, %v865_v30 }
0x1343   :  { %2276 = vmatprep.mubr.msk.f32.mxu0 %vm2665_vm2, %v2666_v9  ;;  %2425 = vmatpush3.bf16.msra.mxu0 %v2903_v56 }
0x1344   :  { %2426 = vmatprep.subr.bf16.mxu0 %v2664_v6 }
0x1347   :  { %2428 = vmatpush3.bf16.msra.mxu0 %v2909_v60 }
0x1348   :  { %2435 = vmatprep.subr.bf16.mxu0 %v2664_v6 }
0x134a   :  { %2277 = vmatmul.mubr.msk.f32.vlgmr.msra.gmra.mrb[10].mxu0 %vm148_vm3, %v2056_v61 }
0x134b   :  { %2437 = vmatpush3.bf16.msra.mxu0 %v2903_v56  ;;  %2298 = vmatprep.mubr.msk.f32.mxu0 %vm2665_vm2, %v2666_v9 }
0x134c   :  { %2438 = vmatprep.subr.bf16.mxu0 %v2664_v6 }
0x134f   :  { %2440 = vmatpush3.bf16.msra.mxu0 %v2909_v60 }
0x1350   :  { %2447 = vmatprep.subr.bf16.mxu0 %v2664_v6 }
0x1415   :  { %v937_v32 = vpop.f32.mrb[8].mxu0 }
0x1416   :  { %v941_v33 = vadd.f32 %v937_v32, %v868_v31  ;;  %v2256_v34 = vpop.f32.mrb[9].mxu0 }
0x1418   :  { %2544 = vtanh.f32 %v941_v33  ;;  %v942_v36 = vsub.f32 0.0, %v941_v33 }
0x141a   :  { %v943_v37 = vmul.f32 1.442695, %v942_v36 }
0x141c   :  { %2546 = vpow2.f32 %v943_v37 }
0x141d   :  { %v1150_v0 = vpop.f32.mrb[10].mxu0 }
0x141e   :  { %v2278_v10 = vpop.f32.mrb[11].mxu0 }
0x1422   :  { %v2545_v35 = vpop.eup %2544 }
0x1423   :  { %950 = vrot.lane.b32.xlu1 %v2545_v35, %s2667_s23 }
0x1426   :  { %v2547_v38 = vpop.eup %2546 }
0x1427   :  { %v945_v39 = vadd.f32 1.0, %v2547_v38 }
0x1429   :  { %2548 = vrcp.f32 %v945_v39 }
0x1433   :  { %v2549_v40 = vpop.eup %2548 }
0x1434   :  { %v948_v43 = vmul.f32 %v2549_v40, %v856_v26 }
0x1495   :  { %v951_v41 = vpop.permute.xlu1 %950 }
0x1496   :  { %v953_v42 = vmul.f32 %v2549_v40, %v951_v41 }
0x1498   :  { %955 = vrot.lane.b32.xlu0 %v953_v42, %s2668_s5 }
0x150a   :  { %v956_v44 = vpop.permute.xlu0 %955 }
0x150b   :  { %v2877_v45 = vadd.f32 %v956_v44, %v948_v43 }
0x150d   :  { %2550 = vtanh.f32 %v2877_v45 }
0x1517   :  { %v2551_v46 = vpop.eup %2550 }
0x1518   :  { %961 = vrot.lane.b32.xlu1 %v2551_v46, %s2667_s23 }
0x158a   :  { %v962_v58 = vpop.permute.xlu1 %961 }
0x158b   :  { %v964_v59 = vmul.f32 %v2549_v40, %v962_v58 }
0x158d   :  { %966 = vrot.lane.b32.xlu0 %v964_v59, %s2668_s5 }
0x1591   :  { %1162 = vrot.lane.b32.xlu0 %v2057_v7, %s2668_s5 }
0x15ff   :  { %v967_v62 = vpop.permute.xlu0 %966 }
0x1600   :  { %969 = vst.msk [vmem:[#allocation3 + $0xe] sm:$0x3] %vm254_vm4, %v967_v62  ;;  %970 = vst.msk [vmem:[#allocation4] sm:$0x3] %vm254_vm4, %v967_v62 }
0x1603   :  { %v1163_v20 = vpop.permute.xlu0 %1162 }
0x1607   :  { %v986_v63 = vld [vmem:[#allocation3 + $0x8] sm:$0xff] }
0x1608   :  { %2266 = vmatmul.mubr.msk.f32.vlgmr.msra.gmra.mrb[8].mxu1 %vm148_vm3, %v986_v63 }
0x1609   :  { %2431 = vmatpush3.bf16.msra.mxu1 %v2903_v56  ;;  %2287 = vmatprep.mubr.msk.f32.mxu1 %vm2665_vm2, %v2666_v9 }
0x160a   :  { %2432 = vmatprep.subr.bf16.mxu1 %v2664_v6 }
0x160d   :  { %2434 = vmatpush3.bf16.msra.mxu1 %v2909_v60 }
0x160e   :  { %2441 = vmatprep.subr.bf16.mxu1 %v2664_v6 }
0x16db   :  { %v2267_v2 = vpop.f32.mrb[8].mxu1 }
0x16dc   :  { %v1071_v3 = vadd.f32 %v2267_v2, %v2053_v1  ;;  %v1065_v4 = vpop.f32.mrb[9].mxu1 }
0x16dd   :  { %v1066_v5 = vadd.f32 %v2053_v1, %v1065_v4 }
0x16de   :  { %1075 = vst [vmem:[#allocation2 + $0x8] sm:$0xff] %v1071_v3 }
0x16df   :  { %1074 = vst [vmem:[#allocation2] sm:$0xff] %v1066_v5 }
0x16e6   :  { %v1080_v8 = vld [vmem:[#allocation2] sm:$0x3]  ;;  %v1187_v28 = vld [vmem:[#allocation2 + $0x2] sm:$0x3]  ;;  %v1289_v48 = vld [vmem:[#allocation2 + $0x4] sm:$0x3] }
0x16e7   :  { %v1154_v11 = vadd.f32 %v1150_v0, %v1080_v8  ;;  %v1391_v3 = vld [vmem:[#allocation2 + $0x6] sm:$0x3] }
0x16e9   :  { %2552 = vtanh.f32 %v1154_v11  ;;  %v1155_v13 = vsub.f32 0.0, %v1154_v11 }
0x16eb   :  { %v1156_v14 = vmul.f32 1.442695, %v1155_v13 }
0x16ed   :  { %2554 = vpow2.f32 %v1156_v14 }
0x16f3   :  { %v2553_v12 = vpop.eup %2552 }
0x16f4   :  { %1167 = vrot.lane.b32.xlu1 %v2553_v12, %s2667_s23 }
0x16f7   :  { %v2555_v15 = vpop.eup %2554 }
0x16f8   :  { %v1158_v16 = vadd.f32 1.0, %v2555_v15 }
0x16fa   :  { %2556 = vrcp.f32 %v1158_v16 }
0x1704   :  { %v2557_v17 = vpop.eup %2556 }
0x1705   :  { %v1165_v21 = vmul.f32 %v2557_v17, %v1163_v20 }
0x1766   :  { %v1168_v18 = vpop.permute.xlu1 %1167 }
0x1767   :  { %v1170_v19 = vmul.f32 %v2557_v17, %v1168_v18 }
0x1769   :  { %1172 = vrot.lane.b32.xlu1 %v1170_v19, %s2668_s5 }
0x17db   :  { %v1173_v22 = vpop.permute.xlu1 %1172 }
0x17dc   :  { %v1175_v23 = vadd.f32 %v1173_v22, %v1165_v21 }
0x17de   :  { %2558 = vtanh.f32 %v1175_v23 }
0x17e8   :  { %v2559_v24 = vpop.eup %2558 }
0x17e9   :  { %1178 = vrot.lane.b32.xlu0 %v2559_v24, %s2667_s23 }
0x185b   :  { %v1179_v25 = vpop.permute.xlu0 %1178 }
0x185c   :  { %v1181_v26 = vmul.f32 %v2557_v17, %v1179_v25 }
0x185e   :  { %1183 = vrot.lane.b32.xlu1 %v1181_v26, %s2668_s5  ;;  %v1493_v26 = vld [vmem:[#allocation2 + $0x8] sm:$0x3] }
0x18d0   :  { %v1184_v27 = vpop.permute.xlu1 %1183 }
0x18d1   :  { %1186 = vst.msk [vmem:[#allocation3] sm:$0x3] %vm254_vm4, %v1184_v27  ;;  %2288 = vmatmul.mubr.msk.f32.vlgmr.msra.gmra.mrb[10].mxu1 %vm148_vm3, %v1184_v27 }
0x18d2   :  { %2443 = vmatpush3.bf16.msra.mxu1 %v2903_v56  ;;  %2309 = vmatprep.mubr.msk.f32.mxu1 %vm2665_vm2, %v2666_v9 }
0x18d3   :  { %2444 = vmatprep.subr.bf16.mxu1 %v2664_v6 }
0x18d6   :  { %2446 = vmatpush3.bf16.msra.mxu1 %v2909_v60 }
0x18d7   :  { %2453 = vmatprep.subr.bf16.mxu1 %v2664_v6 }
0x19a4   :  { %v1256_v29 = vpop.f32.mrb[10].mxu1 }
0x19a5   :  { %v1260_v30 = vadd.f32 %v1256_v29, %v1187_v28  ;;  %v2289_v31 = vpop.f32.mrb[11].mxu1 }
0x19a7   :  { %2560 = vtanh.f32 %v1260_v30  ;;  %v1261_v33 = vsub.f32 0.0, %v1260_v30 }
0x19a9   :  { %v1262_v34 = vmul.f32 1.442695, %v1261_v33 }
0x19ab   :  { %2562 = vpow2.f32 %v1262_v34 }
0x19b1   :  { %v2561_v32 = vpop.eup %2560 }
0x19b2   :  { %1269 = vrot.lane.b32.xlu0 %v2561_v32, %s2667_s23 }
0x19b5   :  { %v2563_v35 = vpop.eup %2562 }
0x19b6   :  { %v1264_v36 = vadd.f32 1.0, %v2563_v35 }
0x19b8   :  { %2564 = vrcp.f32 %v1264_v36 }
0x19c2   :  { %v2565_v37 = vpop.eup %2564 }
0x19c3   :  { %v1267_v40 = vmul.f32 %v2565_v37, %v1175_v23 }
0x1a24   :  { %v1270_v38 = vpop.permute.xlu0 %1269 }
0x1a25   :  { %v1272_v39 = vmul.f32 %v2565_v37, %v1270_v38 }
0x1a27   :  { %1274 = vrot.lane.b32.xlu1 %v1272_v39, %s2668_s5 }
0x1a99   :  { %v1275_v41 = vpop.permute.xlu1 %1274 }
0x1a9a   :  { %v1277_v42 = vadd.f32 %v1275_v41, %v1267_v40 }
0x1a9c   :  { %2566 = vtanh.f32 %v1277_v42 }
0x1aa6   :  { %v2567_v43 = vpop.eup %2566 }
0x1aa7   :  { %1280 = vrot.lane.b32.xlu0 %v2567_v43, %s2667_s23 }
0x1b19   :  { %v1281_v44 = vpop.permute.xlu0 %1280 }
0x1b1a   :  { %v1283_v46 = vmul.f32 %v2565_v37, %v1281_v44 }
0x1b1c   :  { %1285 = vrot.lane.b32.xlu1 %v1283_v46, %s2668_s5  ;;  %v1595_v46 = vld [vmem:[#allocation2 + $0xa] sm:$0x3] }
0x1b8e   :  { %v1286_v47 = vpop.permute.xlu1 %1285 }
0x1b8f   :  { %1288 = vst.msk [vmem:[#allocation3 + $0x2] sm:$0x3] %vm254_vm4, %v1286_v47  ;;  %2299 = vmatmul.mubr.msk.f32.vlgmr.msra.gmra.mrb[12].mxu0 %vm148_vm3, %v1286_v47 }
0x1b90   :  { %2449 = vmatpush3.bf16.msra.mxu0 %v2903_v56  ;;  %2320 = vmatprep.mubr.msk.f32.mxu0 %vm2665_vm2, %v2666_v9 }
0x1b91   :  { %2450 = vmatprep.subr.bf16.mxu0 %v2664_v6 }
0x1b94   :  { %2452 = vmatpush3.bf16.msra.mxu0 %v2909_v60 }
0x1b95   :  { %2459 = vmatprep.subr.bf16.mxu0 %v2664_v6 }
0x1c62   :  { %v1358_v49 = vpop.f32.mrb[12].mxu0 }
0x1c63   :  { %v1362_v50 = vadd.f32 %v1358_v49, %v1289_v48  ;;  %v2300_v51 = vpop.f32.mrb[13].mxu0 }
0x1c65   :  { %2568 = vtanh.f32 %v1362_v50  ;;  %v1363_v53 = vsub.f32 0.0, %v1362_v50 }
0x1c67   :  { %v1364_v54 = vmul.f32 1.442695, %v1363_v53 }
0x1c69   :  { %2570 = vpow2.f32 %v1364_v54 }
0x1c6f   :  { %v2569_v52 = vpop.eup %2568 }
0x1c70   :  { %1371 = vrot.lane.b32.xlu0 %v2569_v52, %s2667_s23 }
0x1c73   :  { %v2571_v55 = vpop.eup %2570 }
0x1c74   :  { %v1366_v57 = vadd.f32 1.0, %v2571_v55 }
0x1c76   :  { %2572 = vrcp.f32 %v1366_v57 }
0x1c80   :  { %v2573_v58 = vpop.eup %2572 }
0x1c81   :  { %v1369_v61 = vmul.f32 %v2573_v58, %v1277_v42 }
0x1ce2   :  { %v1372_v59 = vpop.permute.xlu0 %1371 }
0x1ce3   :  { %v1374_v7 = vmul.f32 %v2573_v58, %v1372_v59 }
0x1ce5   :  { %1376 = vrot.lane.b32.xlu1 %v1374_v7, %s2668_s5 }
0x1d57   :  { %v1377_v62 = vpop.permute.xlu1 %1376 }
0x1d58   :  { %v1379_v63 = vadd.f32 %v1377_v62, %v1369_v61 }
0x1d5a   :  { %2574 = vtanh.f32 %v1379_v63 }
0x1d64   :  { %v2575_v0 = vpop.eup %2574 }
0x1d65   :  { %1382 = vrot.lane.b32.xlu0 %v2575_v0, %s2667_s23 }
0x1dd7   :  { %v1383_v10 = vpop.permute.xlu0 %1382 }
0x1dd8   :  { %v1385_v1 = vmul.f32 %v2573_v58, %v1383_v10 }
0x1dda   :  { %1387 = vrot.lane.b32.xlu1 %v1385_v1, %s2668_s5 }
0x1e4c   :  { %v1388_v2 = vpop.permute.xlu1 %1387 }
0x1e4d   :  { %1390 = vst.msk [vmem:[#allocation3 + $0x4] sm:$0x3] %vm254_vm4, %v1388_v2  ;;  %2310 = vmatmul.mubr.msk.f32.vlgmr.msra.gmra.mrb[12].mxu1 %vm148_vm3, %v1388_v2 }
0x1e4e   :  { %2455 = vmatpush3.bf16.msra.mxu1 %v2903_v56  ;;  %2331 = vmatprep.mubr.msk.f32.mxu1 %vm2665_vm2, %v2666_v9 }
0x1e4f   :  { %2456 = vmatprep.subr.bf16.mxu1 %v2664_v6 }
0x1e52   :  { %2458 = vmatpush3.bf16.msra.mxu1 %v2909_v60 }
0x1e53   :  { %2465 = vmatprep.subr.bf16.mxu1 %v2664_v6 }
0x1f20   :  { %v1460_v4 = vpop.f32.mrb[12].mxu1 }
0x1f21   :  { %v1464_v5 = vadd.f32 %v1460_v4, %v1391_v3  ;;  %v2311_v8 = vpop.f32.mrb[13].mxu1 }
0x1f23   :  { %2576 = vtanh.f32 %v1464_v5  ;;  %v1465_v12 = vsub.f32 0.0, %v1464_v5 }
0x1f25   :  { %v1466_v13 = vmul.f32 1.442695, %v1465_v12 }
0x1f27   :  { %2578 = vpow2.f32 %v1466_v13 }
0x1f2d   :  { %v2577_v11 = vpop.eup %2576 }
0x1f2e   :  { %1473 = vrot.lane.b32.xlu0 %v2577_v11, %s2667_s23 }
0x1f31   :  { %v2579_v14 = vpop.eup %2578 }
0x1f32   :  { %v1468_v15 = vadd.f32 1.0, %v2579_v14 }
0x1f34   :  { %2580 = vrcp.f32 %v1468_v15 }
0x1f3e   :  { %v2581_v16 = vpop.eup %2580 }
0x1f3f   :  { %v1471_v19 = vmul.f32 %v2581_v16, %v1379_v63  ;;  %v1697_v63 = vld [vmem:[#allocation2 + $0xc] sm:$0x3] }
0x1fa0   :  { %v1474_v17 = vpop.permute.xlu0 %1473 }
0x1fa1   :  { %v1476_v18 = vmul.f32 %v2581_v16, %v1474_v17 }
0x1fa3   :  { %1478 = vrot.lane.b32.xlu1 %v1476_v18, %s2668_s5 }
0x2015   :  { %v1479_v20 = vpop.permute.xlu1 %1478 }
0x2016   :  { %v1481_v21 = vadd.f32 %v1479_v20, %v1471_v19 }
0x2018   :  { %2582 = vtanh.f32 %v1481_v21 }
0x2022   :  { %v2583_v22 = vpop.eup %2582 }
0x2023   :  { %1484 = vrot.lane.b32.xlu0 %v2583_v22, %s2667_s23 }
0x2095   :  { %v1485_v23 = vpop.permute.xlu0 %1484 }
0x2096   :  { %v1487_v24 = vmul.f32 %v2581_v16, %v1485_v23 }
0x2098   :  { %1489 = vrot.lane.b32.xlu1 %v1487_v24, %s2668_s5 }
0x210a   :  { %v1490_v25 = vpop.permute.xlu1 %1489 }
0x210b   :  { %1492 = vst.msk [vmem:[#allocation3 + $0x6] sm:$0x3] %vm254_vm4, %v1490_v25  ;;  %2321 = vmatmul.mubr.msk.f32.vlgmr.msra.gmra.mrb[14].mxu0 %vm148_vm3, %v1490_v25 }
0x210c   :  { %2461 = vmatpush3.bf16.msra.mxu0 %v2903_v56  ;;  %2342 = vmatprep.mubr.msk.f32.mxu0 %vm2665_vm2, %v2666_v9 }
0x210d   :  { %2462 = vmatprep.subr.bf16.mxu0 %v2664_v6 }
0x2110   :  { %2464 = vmatpush3.bf16.msra.mxu0 %v2909_v60 }
0x2112   :  { %v1909_v62 = vld [vmem:[#allocation3] sm:$0xff] }
0x21de   :  { %v1562_v27 = vpop.f32.mrb[14].mxu0 }
0x21df   :  { %v1566_v28 = vadd.f32 %v1562_v27, %v1493_v26  ;;  %v2322_v29 = vpop.f32.mrb[15].mxu0 }
0x21e1   :  { %2584 = vtanh.f32 %v1566_v28  ;;  %v1567_v31 = vsub.f32 0.0, %v1566_v28 }
0x21e3   :  { %v1568_v32 = vmul.f32 1.442695, %v1567_v31 }
0x21e5   :  { %2586 = vpow2.f32 %v1568_v32 }
0x21eb   :  { %v2585_v30 = vpop.eup %2584 }
0x21ec   :  { %1575 = vrot.lane.b32.xlu0 %v2585_v30, %s2667_s23 }
0x21ef   :  { %v2587_v33 = vpop.eup %2586 }
0x21f0   :  { %v1570_v34 = vadd.f32 1.0, %v2587_v33 }
0x21f2   :  { %2588 = vrcp.f32 %v1570_v34 }
0x21fc   :  { %v2589_v35 = vpop.eup %2588 }
0x21fd   :  { %v1573_v38 = vmul.f32 %v2589_v35, %v1481_v21  ;;  %v1799_v21 = vld [vmem:[#allocation2 + $0xe] sm:$0x3] }
0x225e   :  { %v1576_v36 = vpop.permute.xlu0 %1575 }
0x225f   :  { %v1578_v37 = vmul.f32 %v2589_v35, %v1576_v36 }
0x2261   :  { %1580 = vrot.lane.b32.xlu1 %v1578_v37, %s2668_s5  ;;  %v1911_v37 = vld [vmem:[%s3082_s9] sm:$0xff] }
0x22d3   :  { %v1581_v39 = vpop.permute.xlu1 %1580 }
0x22d4   :  { %v1583_v40 = vadd.f32 %v1581_v39, %v1573_v38  ;;  %v1912_v38 = vld [vmem:[%s3082_s9 + $0x8] sm:$0xff] }
0x22d5   :  { %v2471_v39 = vpack.c.bf16 %v1912_v38, %v1911_v37 }
0x22d6   :  { %2590 = vtanh.f32 %v1583_v40 }
0x22d7   :  { %2472 = vmatprep.subr.bf16.mxu0 %v2471_v39 }
0x22e0   :  { %v2591_v41 = vpop.eup %2590 }
0x22e1   :  { %1586 = vrot.lane.b32.xlu0 %v2591_v41, %s2667_s23  ;;  %v1914_v41 = vld [vmem:[%s3082_s9 + $0x18] sm:$0xff] }
0x2353   :  { %v1587_v42 = vpop.permute.xlu0 %1586 }
0x2354   :  { %v1589_v43 = vmul.f32 %v2589_v35, %v1587_v42 }
0x2356   :  { %1591 = vrot.lane.b32.xlu1 %v1589_v43, %s2668_s5 }
0x23c8   :  { %v1592_v44 = vpop.permute.xlu1 %1591 }
0x23c9   :  { %1594 = vst.msk [vmem:[#allocation3 + $0x8] sm:$0x3] %vm254_vm4, %v1592_v44  ;;  %2332 = vmatmul.mubr.msk.f32.vlgmr.msra.gmra.mrb[14].mxu1 %vm148_vm3, %v1592_v44 }
0x23ca   :  { %2467 = vmatpush3.bf16.msra.mxu1 %v2903_v56  ;;  %2353 = vmatprep.mubr.msk.f32.mxu1 %vm2665_vm2, %v2666_v9 }
0x23cb   :  { %2468 = vmatprep.subr.bf16.mxu1 %v2664_v6 }
0x23ce   :  { %2470 = vmatpush3.bf16.msra.mxu1 %v2909_v60 }
0x249c   :  { %v1664_v47 = vpop.f32.mrb[14].mxu1 }
0x249d   :  { %v1668_v48 = vadd.f32 %v1664_v47, %v1595_v46  ;;  %v2333_v49 = vpop.f32.mrb[15].mxu1 }
0x249f   :  { %2592 = vtanh.f32 %v1668_v48  ;;  %v1669_v51 = vsub.f32 0.0, %v1668_v48 }
0x24a1   :  { %v1670_v52 = vmul.f32 1.442695, %v1669_v51 }
0x24a3   :  { %2594 = vpow2.f32 %v1670_v52 }
0x24a9   :  { %v2593_v50 = vpop.eup %2592 }
0x24aa   :  { %1677 = vrot.lane.b32.xlu0 %v2593_v50, %s2667_s23 }
0x24ad   :  { %v2595_v53 = vpop.eup %2594 }
0x24ae   :  { %v1672_v56 = vadd.f32 1.0, %v2595_v53 }
0x24b0   :  { %2596 = vrcp.f32 %v1672_v56 }
0x24ba   :  { %v2597_v54 = vpop.eup %2596 }
0x24bb   :  { %v1675_v6 = vmul.f32 %v2597_v54, %v1583_v40  ;;  %v1913_v40 = vld [vmem:[%s3082_s9 + $0x10] sm:$0xff]  ;;  %s2670_s9 = smov [#allocation4]  }
0x24bc   :  { %s2012_s15 = sshll.u32 %s2670_s9, 4  ;;  %s2013_s15 = int_to_ptr.vmem [resolvable:$true] %s2012_s15 }
0x24bd   :  { %s2616_s3 = scalar_lea.vmem %s2013_s15, 64  ;;  %p2621_p1 = scmp.lt.s32.totalorder %s2013_s15, %s2013_s15 }
0x24be   :  { %p2617_p0 = scmp.ne.s32.totalorder %s2013_s15, %s2616_s3  ;;  %p2622_p2 = scmp.lt.s32.totalorder %s2616_s3, %s2616_s3 }
0x24c0   :  { %p2623_p3 = por %p2622_p2, %p2621_p1 }
0x24c2   :  { %p2624_p4 = pnand %p2623_p3, %p2617_p0 }
0x251c   :  { %v1678_v9 = vpop.permute.xlu0 %1677 }
0x251d   :  { %v1680_v55 = vmul.f32 %v2597_v54, %v1678_v9 }
0x251f   :  { %1682 = vrot.lane.b32.xlu1 %v1680_v55, %s2668_s5 }
0x2591   :  { %v1683_v60 = vpop.permute.xlu1 %1682 }
0x2592   :  { %v1685_v57 = vadd.f32 %v1683_v60, %v1675_v6 }
0x2594   :  { %2598 = vtanh.f32 %v1685_v57 }
0x259e   :  { %v2599_v58 = vpop.eup %2598 }
0x259f   :  { %1688 = vrot.lane.b32.xlu0 %v2599_v58, %s2667_s23 }
0x2611   :  { %v1689_v59 = vpop.permute.xlu0 %1688 }
0x2612   :  { %v1691_v7 = vmul.f32 %v2597_v54, %v1689_v59 }
0x2614   :  { %1693 = vrot.lane.b32.xlu1 %v1691_v7, %s2668_s5 }
0x2686   :  { %v1694_v61 = vpop.permute.xlu1 %1693 }
0x2687   :  { %1696 = vst.msk [vmem:[#allocation3 + $0xa] sm:$0x3] %vm254_vm4, %v1694_v61  ;;  %2343 = vmatmul.mubr.msk.f32.vlgmr.msra.gmra.mrb[16].mxu0 %vm148_vm3, %v1694_v61 }
0x2688   :  { %2364 = vmatprep.mubr.msk.f32.mxu0 %vm148_vm3, %v1909_v62  ;;  %2474 = vmatpush3.bf16.msra.mxu0 %v2471_v39 }
0x275a   :  { %v1766_v0 = vpop.f32.mrb[16].mxu0 }
0x275b   :  { %v1770_v10 = vadd.f32 %v1766_v0, %v1697_v63  ;;  %v2344_v1 = vpop.f32.mrb[17].mxu0 }
0x275d   :  { %2600 = vtanh.f32 %v1770_v10  ;;  %v1771_v3 = vsub.f32 0.0, %v1770_v10 }
0x275f   :  { %v1772_v4 = vmul.f32 1.442695, %v1771_v3 }
0x2761   :  { %2602 = vpow2.f32 %v1772_v4 }
0x2767   :  { %v2601_v2 = vpop.eup %2600 }
0x2768   :  { %1779 = vrot.lane.b32.xlu0 %v2601_v2, %s2667_s23 }
0x276b   :  { %v2603_v5 = vpop.eup %2602 }
0x276c   :  { %v1774_v8 = vadd.f32 1.0, %v2603_v5 }
0x276e   :  { %2604 = vrcp.f32 %v1774_v8 }
0x2778   :  { %v2605_v11 = vpop.eup %2604 }
0x2779   :  { %v1777_v14 = vmul.f32 %v2605_v11, %v1685_v57 }
0x27da   :  { %v1780_v12 = vpop.permute.xlu0 %1779 }
0x27db   :  { %v1782_v13 = vmul.f32 %v2605_v11, %v1780_v12 }
0x27dd   :  { %1784 = vrot.lane.b32.xlu1 %v1782_v13, %s2668_s5 }
0x284f   :  { %v1785_v15 = vpop.permute.xlu1 %1784 }
0x2850   :  { %v1787_v16 = vadd.f32 %v1785_v15, %v1777_v14 }
0x2852   :  { %2606 = vtanh.f32 %v1787_v16 }
0x285c   :  { %v2607_v17 = vpop.eup %2606 }
0x285d   :  { %1790 = vrot.lane.b32.xlu0 %v2607_v17, %s2667_s23 }
0x28cf   :  { %v1791_v18 = vpop.permute.xlu0 %1790 }
0x28d0   :  { %v1793_v19 = vmul.f32 %v2605_v11, %v1791_v18 }
0x28d2   :  { %1795 = vrot.lane.b32.xlu1 %v1793_v19, %s2668_s5 }
0x2944   :  { %v1796_v20 = vpop.permute.xlu1 %1795 }
0x2945   :  { %1798 = vst.msk [vmem:[#allocation3 + $0xc] sm:$0x3] %vm254_vm4, %v1796_v20  ;;  %2354 = vmatmul.mubr.msk.f32.vlgmr.msra.gmra.mrb[16].mxu1 %vm148_vm3, %v1796_v20 }
0x2a18   :  { %v1868_v22 = vpop.f32.mrb[16].mxu1 }
0x2a19   :  { %v1872_v23 = vadd.f32 %v1868_v22, %v1799_v21  ;;  %v2355_v24 = vpop.f32.mrb[17].mxu1 }
0x2a1b   :  { %2608 = vtanh.f32 %v1872_v23  ;;  %v1873_v26 = vsub.f32 0.0, %v1872_v23 }
0x2a1d   :  { %v1874_v27 = vmul.f32 1.442695, %v1873_v26 }
0x2a1f   :  { %2610 = vpow2.f32 %v1874_v27 }
0x2a25   :  { %v2609_v25 = vpop.eup %2608 }
0x2a26   :  { %1881 = vrot.lane.b32.xlu0 %v2609_v25, %s2667_s23 }
0x2a29   :  { %v2611_v28 = vpop.eup %2610 }
0x2a2a   :  { %v1876_v29 = vadd.f32 1.0, %v2611_v28 }
0x2a2c   :  { %2612 = vrcp.f32 %v1876_v29 }
0x2a36   :  { %v2613_v30 = vpop.eup %2612 }
0x2a37   :  { %v1879_v33 = vmul.f32 %v2613_v30, %v1787_v16 }
0x2a98   :  { %v1882_v31 = vpop.permute.xlu0 %1881 }
0x2a99   :  { %v1884_v32 = vmul.f32 %v2613_v30, %v1882_v31 }
0x2a9b   :  { %1886 = vrot.lane.b32.xlu1 %v1884_v32, %s2668_s5 }
0x2b0d   :  { %v1887_v34 = vpop.permute.xlu1 %1886 }
0x2b0e   :  { %v1889_v35 = vadd.f32 %v1887_v34, %v1879_v33 }
0x2b10   :  { %2614 = vtanh.f32 %v1889_v35 }
0x2b1a   :  { %v2615_v36 = vpop.eup %2614 }
0x2b1b   :  { %1892 = vrot.lane.b32.xlu0 %v2615_v36, %s2667_s23 }
0x2b1f   :  { %972 = vrot.lane.b32.xlu0 %v2877_v45, %s2669_s7  ;;  %v2475_v45 = vpack.c.bf16 %v1914_v41, %v1913_v40 }
0x2b21   :  { %2476 = vmatprep.subr.bf16.mxu0 %v2475_v45 }
0x2b22   :  { %2478 = vmatpush3.bf16.msra.mxu0 %v2475_v45 }
0x2b8d   :  { %v1893_v42 = vpop.permute.xlu0 %1892 }
0x2b8e   :  { %v1895_v43 = vmul.f32 %v2613_v30, %v1893_v42 }
0x2b90   :  { %1897 = vrot.lane.b32.xlu1 %v1895_v43, %s2668_s5 }
0x2b91   :  { %v973_v44 = vpop.permute.xlu0 %972 }
0x2b92   :  { %975 = vst.msk [vmem:[#allocation6] sm:$0x3] %vm254_vm4, %v973_v44 }
0x2b94   :  { %1904 = vrot.lane.b32.xlu1 %v1889_v35, %s2669_s7 }
0x2c02   :  { %v1898_v46 = vpop.permute.xlu1 %1897 }
0x2c03   :  { %1900 = vst.msk [vmem:[#allocation3 + $0xe] sm:$0x3] %vm254_vm4, %v1898_v46  ;;  %1902 = vst.msk [vmem:[#allocation4 + $0x2] sm:$0x3] %vm254_vm4, %v1898_v46 }
0x2c06   :  { %v1905_v47 = vpop.permute.xlu1 %1904 }
0x2c07   :  { %1908 = vst.msk [vmem:[#allocation6 + $0x2] sm:$0x3] %vm254_vm4, %v1905_v47 }
0x2c0a   :  { %v1910_v48 = vld [vmem:[#allocation3 + $0x8] sm:$0xff] }
0x2c0b   :  { %2365 = vmatmul.mubr.msk.f32.vlgmr.msra.gmra.mrb[18].mxu0 %vm148_vm3, %v1910_v48 }
0x2c0c   :  { %2627 = shalt.err (!%p2624_p4)
}
0x2c0d   :  { %s2628_s19 = scalar_lea.hbm %s3085_s12, 64 }
0x2c0e   :  { %p2629_p5 = scmp.ne.s32.totalorder %s3085_s12, %s2628_s19  ;;  %p2632_p6 = scmp.lt.u32.totalorder %s2628_s19, %s3085_s12 }
0x2c10   :  { %p2634_p7 = pnand %p2632_p6, %p2629_p5 }
0x2c12   :  { %2637 = shalt.err (!%p2634_p7)
}
0x2c13   :  { %s2672_s22 = smov 2   ;;  %s2638_s1 = scalar_lea.vmem %s2025_s17, 64 }
0x2c14   :  { %2018 = dma.vmem_to_hbm [thread:$0]  %s2013_s15, 64, %s3085_s12, [#allocation5], %s2668_s5, %s2668_s5, %s2672_s22  }
0x2c15   :  { %p2639_p8 = scmp.ne.s32.totalorder %s2025_s17, %s2638_s1  ;;  %p2643_p9 = scmp.lt.s32.totalorder %s2025_s17, %s2025_s17 }
0x2c16   :  { %p2644_p10 = scmp.lt.s32.totalorder %s2638_s1, %s2638_s1 }
0x2c18   :  { %p2645_p11 = por %p2644_p10, %p2643_p9 }
0x2c1a   :  { %p2646_p12 = pnand %p2645_p11, %p2639_p8 }
0x2c1c   :  { %2649 = shalt.err (!%p2646_p12)
}
0x2c1d   :  { %s2650_s8 = scalar_lea.hbm %s3086_s13, 64 }
0x2c1e   :  { %p2651_p13 = scmp.ne.s32.totalorder %s3086_s13, %s2650_s8  ;;  %p2654_p0 = scmp.lt.u32.totalorder %s2650_s8, %s3086_s13 }
0x2c20   :  { %p2656_p1 = pnand %p2654_p0, %p2651_p13 }
0x2c22   :  { %2659 = shalt.err (!%p2656_p1)
}
0x2c23   :  { %2030 = dma.vmem_to_hbm [thread:$0]  %s2025_s17, 64, %s3086_s13, [#allocation7], %s2668_s5, %s2668_s5, %s2672_s22  }
0x2c24   :  { %v2066_v49 = vld [vmem:[%s3083_s10] ss:$0 sm:$0xff] }
0x2cde   :  { %v2366_v50 = vpop.f32.mrb[18].mxu0 }
0x2cdf   :  { %v2000_v51 = vadd.f32 %v2366_v50, %v2066_v49  ;;  %v1994_v52 = vpop.f32.mrb[19].mxu0 }
0x2ce0   :  { %v1995_v53 = vadd.f32 %v2066_v49, %v1994_v52 }
0x2ce1   :  { %2004 = vst.msk [vmem:[%s3084_s11 + $0x8] sm:$0xff] %vm57_vm1, %v2000_v51 }
0x2ce2   :  { %2003 = vst.msk [vmem:[%s3084_s11] sm:$0xff] %vm57_vm1, %v1995_v53 }
0x2ce3   :  { %2660 = dma.done.wait [#allocation5], 64  }
0x2ce4   :  { %2661 = vsyncadd [#allocation5], 4294967232 }
0x2ce5   :  { %2662 = dma.done.wait [#allocation7], 64  }
0x2ce6   :  { %2663 = vsyncadd [#allocation7], 4294967232 }
0x2ce7   :  { %2039 = vsyncpa [#allocation5], 1 }
0x2ce8   :  { %2040 = vsyncpa [#allocation7], 1 }

</bundles_post_ra>
